<compile_context>
chip_gen: v7x
topology: tpu7x:2x2x1
jax: 0.10.0
libtpu: 0.0.40
codegen_flags: <defaults>
</compile_context>

<pallas_src>
import functools
import math

import numpy as np
import jax
import jax.numpy as jnp
from jax import lax
from jax.experimental import pallas as pl
from jax.experimental.pallas import tpu as pltpu

KH = KW = 3
SLIDE_WINSIZE = float(KH * KW)        # weight_maskUpdater = ones(1,1,3,3), multi_channel=False
GN_GROUPS = 8
GN_EPS = 1e-5
LRELU_SLOPE = 0.01                    # nn.LeakyReLU default

# Known-safe scoped-VMEM ceiling on v5e / v6e / v7x at the default tile size.
#   v5e/v6e (128 MiB physical): may be raised to 64-96 MiB together with
#                               max_tile_pixels = 4096-8192 for bigger tiles.
#   v7x     (64 MiB physical):  keep <= 32 MiB; re-derive max_tile_pixels if
#                               channel counts reach 128+.
VMEM_LIMIT_BYTES = 32 * 1024 * 1024


# ----------------------------- Pallas kernels ------------------------------ #
def _pconv_stats_kernel(slab_ref, rm_ref, w_ref, b_ref,
                        y_ref, s_ref, ss_ref, *, taps, p):
    """Partial conv as one fused MXU matmul + per-channel sum / sum-sq accumulation.

    slab_ref: (1, 1, n_ph, Cin, P+HL) bf16  flat width-padded row band (+halo rows)
    rm_ref  : (1, 1, 2, P)  f32  row 0: mask ratio (incl. *um), row 1: update_mask
    w_ref   : (Cout, 9*Cin) bf16 tap-major / channel-minor weight matrix
    b_ref   : (Cout, 1)     f32
    y_ref   : (1, 1, Cout, P) bf16  partial-conv output (renorm + bias applied)
    s_ref/ss_ref: (1, Cout, 1) f32  GroupNorm stats, accumulated across row tiles
    """
    t = pl.program_id(1)

    # 9 statically shifted (Cin, P) views of the flat band -> (9*Cin, P) patches.
    pieces = [slab_ref[0, 0, ph, :, off:off + p] for (ph, off) in taps]
    patches = jnp.concatenate(pieces, axis=0)                       # (9*Cin, P) bf16
    raw = jnp.dot(w_ref[...], patches,                              # one MXU matmul
                  preferred_element_type=jnp.float32)               # (Cout, P) f32

    ratio = rm_ref[0, 0, 0:1, :]                                    # (1, P)
    um = rm_ref[0, 0, 1:2, :]                                       # (1, P)
    # PartialConv2d: ((raw+b - b)*mask_ratio + b)*um == raw*(mask_ratio*um) + b*um
    out = raw * ratio + b_ref[...] * um                             # (Cout, P) f32
    y_ref[0, 0] = out.astype(y_ref.dtype)

    s = jnp.sum(out, axis=1, keepdims=True)                         # (Cout, 1)
    ss = jnp.sum(out * out, axis=1, keepdims=True)

    @pl.when(t == 0)
    def _():
        s_ref[0] = jnp.zeros_like(s_ref[0])
        ss_ref[0] = jnp.zeros_like(ss_ref[0])

    s_ref[0] = s_ref[0] + s
    ss_ref[0] = ss_ref[0] + ss


def _gn_act_kernel(*refs, apply_mask):
    """Fused GroupNorm affine + LeakyReLU (+ update-mask multiply for the next conv)."""
    if apply_mask:
        y_ref, sc_ref, sh_ref, rm_ref, o_ref = refs
    else:
        y_ref, sc_ref, sh_ref, o_ref = refs
    v = y_ref[0, 0].astype(jnp.float32) * sc_ref[0] + sh_ref[0]     # (Cout, P)
    v = jnp.where(v >= 0, v, LRELU_SLOPE * v)                       # LeakyReLU
    if apply_mask:
        v = v * rm_ref[0, 0, 1:2, :]                                # * update_mask
    o_ref[0, 0] = v.astype(o_ref.dtype)


# ------------------------------ JAX glue ----------------------------------- #
def _pick_tile_rows(ho, wq, max_pixels):
    """Rows per tile.  Prefer th*wq a multiple of 128 (lane-dense unmasked stores)."""
    th_fit = max(1, max_pixels // wq)
    th0 = 128 // math.gcd(wq, 128)
    if th0 <= th_fit and th0 <= ho:
        return th0 * max(1, min(th_fit // th0, -(-ho // th0)))
    return min(th_fit, ho)


def _box_count(mask, stride):
    """3x3 box sum of the mask with zero padding 1 (conv of mask with ones(3,3))."""
    n, h, w = mask.shape
    mp = jnp.pad(mask, ((0, 0), (1, 1), (1, 1)))
    ho = (h - 1) // stride + 1
    wo = (w - 1) // stride + 1
    c = jnp.zeros((n, ho, wo), jnp.float32)
    for dh in range(KH):
        for dw in range(KW):
            c = c + mp[:, dh: dh + stride * (ho - 1) + 1: stride,
                       dw: dw + stride * (wo - 1) + 1: stride]
    return c, ho, wo


def _make_rm(count, um, ho, wo, ho_pad, wq, t_cnt, th):
    """ratio / update_mask, flat width-padded, zeros at junk cols & ragged pad rows."""
    n = count.shape[0]
    # Exact PartialConv2d renorm: mask_ratio*um = slide/(count+eps) * um * um.
    ratio = SLIDE_WINSIZE / (count + 1e-8) * um * um
    pad = ((0, 0), (0, ho_pad - ho), (0, wq - wo))
    rm = jnp.stack([jnp.pad(ratio, pad), jnp.pad(um, pad)], axis=1)  # (N,2,ho_pad,wq)
    return rm.reshape(n, 2, t_cnt, th * wq).transpose(0, 2, 1, 3)    # (N,T,2,P)


def _prep_stride1(xm, th, t_cnt, hl_rows=3):
    """Masked input (N,Cin,H,W) f32 -> per-tile flat slabs (N,T,1,Cin,(th+hl)*(W+2)) bf16."""
    n, cin, h, w = xm.shape
    wp = w + 2
    rows_total = t_cnt * th + hl_rows
    xpad = jnp.pad(xm.astype(jnp.bfloat16),
                   ((0, 0), (0, 0), (1, rows_total - h - 1), (1, 1)))
    slab = jnp.stack([xpad[:, :, t * th: t * th + th + hl_rows, :]
                      for t in range(t_cnt)], axis=1)                # (N,T,Cin,th+hl,wp)
    return slab.reshape(n, t_cnt, 1, cin, (th + hl_rows) * wp), wp


def _prep_stride2(y_flat, h, w, th, t_cnt, wp_prev, th_prev, t_prev, hl_rows=2):
    """Stage-1 output (N,T1,Cout,th1*wp_prev) bf16 (already *um) -> 2x2 polyphase
    flat slabs (N,T,4,Cout,(th+hl)*wq) bf16 for the stride-2 conv."""
    n, _, cout, _ = y_flat.shape
    wq = (w + 2) // 2
    ybig = (y_flat.reshape(n, t_prev, cout, th_prev, wp_prev)
            .transpose(0, 2, 1, 3, 4)
            .reshape(n, cout, t_prev * th_prev, wp_prev))
    rows_total = 2 * (t_cnt * th + hl_rows)
    # Width-padded rows [0, data(0..W-1), 0]; one zero row on top, zeros below.
    main = jnp.concatenate(
        [jnp.zeros((n, cout, h, 1), jnp.bfloat16), ybig[:, :, :h, :w + 1]], axis=-1)
    p2 = jnp.pad(main, ((0, 0), (0, 0), (1, rows_total - h - 1), (0, 0)))
    phases = jnp.stack([p2[:, :, a::2, b::2] for a in (0, 1) for b in (0, 1)],
                       axis=1)                                       # (N,4,Cout,.,wq)
    slab = jnp.stack([phases[:, :, :, t * th: t * th + th + hl_rows, :]
                      for t in range(t_cnt)], axis=1)                # (N,T,4,Cout,th+hl,wq)
    return slab.reshape(n, t_cnt, 4, cout, (th + hl_rows) * wq), wq


def _conv_gn_act(slab, rm, w_all, bias, gamma, beta, *,
                 taps, apply_mask, out_dtype, n_pix):
    """One PartialConv2d + GroupNorm(8) + LeakyReLU stage on pre-tiled flat slabs.
    Returns y of shape (N, T, Cout, P) in out_dtype (already *update_mask if requested)."""
    n, t_cnt, n_ph, cin, slab_len = slab.shape
    p = rm.shape[-1]
    cout = w_all.shape[0]

    # ---- pass 1: fused partial conv + GN statistics (accumulated across tiles) ----
    yraw, s, ss = pl.pallas_call(
        functools.partial(_pconv_stats_kernel, taps=tuple(taps), p=p),
        grid=(n, t_cnt),
        in_specs=[
            pl.BlockSpec((1, 1, n_ph, cin, slab_len), lambda i, t: (i, t, 0, 0, 0)),
            pl.BlockSpec((1, 1, 2, p), lambda i, t: (i, t, 0, 0)),
            pl.BlockSpec((cout, KH * KW * cin), lambda i, t: (0, 0)),
            pl.BlockSpec((cout, 1), lambda i, t: (0, 0)),
        ],
        out_specs=(
            pl.BlockSpec((1, 1, cout, p), lambda i, t: (i, t, 0, 0)),
            pl.BlockSpec((1, cout, 1), lambda i, t: (i, 0, 0)),
            pl.BlockSpec((1, cout, 1), lambda i, t: (i, 0, 0)),
        ),
        out_shape=(
            jax.ShapeDtypeStruct((n, t_cnt, cout, p), jnp.bfloat16),   # bf16 intermediate
            jax.ShapeDtypeStruct((n, cout, 1), jnp.float32),
            jax.ShapeDtypeStruct((n, cout, 1), jnp.float32),
        ),
        compiler_params=pltpu.CompilerParams(
            dimension_semantics=("parallel", "arbitrary"),
            vmem_limit_bytes=VMEM_LIMIT_BYTES),
    )(slab, rm, w_all, bias)

    # ---- tiny per-(sample, group) stats -> per-channel affine; global pixel count ----
    cg = cout // GN_GROUPS
    cnt = float(cg * n_pix)
    mean_g = s[..., 0].reshape(n, GN_GROUPS, cg).sum(-1) / cnt
    meansq_g = ss[..., 0].reshape(n, GN_GROUPS, cg).sum(-1) / cnt
    var_g = jnp.maximum(meansq_g - mean_g * mean_g, 0.0)
    inv_g = lax.rsqrt(var_g + GN_EPS)
    mean_c = jnp.repeat(mean_g, cg, axis=1)
    inv_c = jnp.repeat(inv_g, cg, axis=1)
    scale = (gamma[None, :] * inv_c).reshape(n, cout, 1).astype(jnp.float32)
    shift = (beta[None, :] - gamma[None, :] * inv_c * mean_c).reshape(n, cout, 1)
    shift = shift.astype(jnp.float32)

    # ---- pass 2: GroupNorm affine + LeakyReLU (+ update-mask multiply) ----
    args = [yraw, scale, shift]
    specs = [
        pl.BlockSpec((1, 1, cout, p), lambda i, t: (i, t, 0, 0)),
        pl.BlockSpec((1, cout, 1), lambda i, t: (i, 0, 0)),
        pl.BlockSpec((1, cout, 1), lambda i, t: (i, 0, 0)),
    ]
    if apply_mask:
        args.append(rm)
        specs.append(pl.BlockSpec((1, 1, 2, p), lambda i, t: (i, t, 0, 0)))
    y = pl.pallas_call(
        functools.partial(_gn_act_kernel, apply_mask=apply_mask),
        grid=(n, t_cnt),
        in_specs=specs,
        out_specs=pl.BlockSpec((1, 1, cout, p), lambda i, t: (i, t, 0, 0)),
        out_shape=jax.ShapeDtypeStruct((n, t_cnt, cout, p), out_dtype),
        compiler_params=pltpu.CompilerParams(
            dimension_semantics=("parallel", "parallel"),
            vmem_limit_bytes=VMEM_LIMIT_BYTES),
    )(*args)
    return y


def down_block_forward(x_nchw, params, mask=None, max_tile_pixels=2048):
    x = x_nchw.astype(jnp.float32)
    n, cin, h, w = x.shape
    assert h % 2 == 0 and w % 2 == 0, "stride-2 stage assumes even H, W"
    if mask is None:
        mask = jnp.ones((n, h, w), jnp.float32)
    cout = params["w1"].shape[0]

    # -------- stage 1: PartialConv(3x3, s=1) + GN(8) + LeakyReLU (output *um1) --------
    count1, ho1, wo1 = _box_count(mask, 1)
    um1 = jnp.clip(count1, 0.0, 1.0)
    wp1 = w + 2
    th1 = _pick_tile_rows(ho1, wp1, max_tile_pixels)
    t1 = -(-ho1 // th1)
    rm1 = _make_rm(count1, um1, ho1, wo1, t1 * th1, wp1, t1, th1)
    slab1, _ = _prep_stride1(x * mask[:, None], th1, t1)
    taps1 = tuple((0, dh * wp1 + dw) for dh in range(KH) for dw in range(KW))
    w1 = params["w1"].transpose(0, 2, 3, 1).reshape(cout, KH * KW * cin)
    w1 = w1.astype(jnp.bfloat16)
    b1 = params["b1"].reshape(cout, 1).astype(jnp.float32)
    y1 = _conv_gn_act(slab1, rm1, w1, b1, params["g1"], params["be1"],
                      taps=taps1, apply_mask=True, out_dtype=jnp.bfloat16,
                      n_pix=ho1 * wo1)                      # (N, T1, Cout, th1*wp1)

    # -------- stage 2: PartialConv(3x3, s=2) + GN(8) + LeakyReLU --------
    count2, ho2, wo2 = _box_count(um1, 2)
    um2 = jnp.clip(count2, 0.0, 1.0)
    wq2 = (w + 2) // 2
    th2 = _pick_tile_rows(ho2, wq2, max_tile_pixels)
    t2 = -(-ho2 // th2)
    rm2 = _make_rm(count2, um2, ho2, wo2, t2 * th2, wq2, t2, th2)
    slab2, _ = _prep_stride2(y1, h, w, th2, t2, wp1, th1, t1)
    taps2 = tuple(((dh % 2) * 2 + (dw % 2), (dh // 2) * wq2 + (dw // 2))
                  for dh in range(KH) for dw in range(KW))
    w2 = params["w2"].transpose(0, 2, 3, 1).reshape(cout, KH * KW * cout)
    w2 = w2.astype(jnp.bfloat16)
    b2 = params["b2"].reshape(cout, 1).astype(jnp.float32)
    y2 = _conv_gn_act(slab2, rm2, w2, b2, params["g2"], params["be2"],
                      taps=taps2, apply_mask=False, out_dtype=jnp.float32,
                      n_pix=ho2 * wo2)                      # (N, T2, Cout, th2*wq2)

    # Single NCHW materialization at the very end (drop junk/pad columns & rows).
    y2 = (y2.reshape(n, t2, cout, th2, wq2)
            .transpose(0, 2, 1, 3, 4)
            .reshape(n, cout, t2 * th2, wq2)[:, :, :ho2, :wo2])
    return y2, um2[:, None]


# ------------------------- pure-JAX reference ------------------------------ #
# Mirrors the module's math (NVIDIA PartialConv2d + GroupNorm + LeakyReLU) with the
# same bf16 cast points as the kernel (conv operands bf16, bf16 conv intermediate).
def _ref_partial_conv(x, mask, wt, b, stride):
    count, _, _ = _box_count(mask, stride)
    um = jnp.clip(count, 0.0, 1.0)
    ratio = SLIDE_WINSIZE / (count + 1e-8) * um
    xm = (x * mask[:, None]).astype(jnp.bfloat16)
    raw = lax.conv_general_dilated(
        xm, wt.astype(jnp.bfloat16), (stride, stride), ((1, 1), (1, 1)),
        dimension_numbers=("NCHW", "OIHW", "NCHW"),
        preferred_element_type=jnp.float32)
    out = raw * (ratio * um)[:, None] + b[None, :, None, None] * um[:, None]
    return out, um


def _ref_gn_lrelu(y_f32, gamma, beta):
    n, c, ho, wo = y_f32.shape
    cg = c // GN_GROUPS
    g = y_f32.reshape(n, GN_GROUPS, cg, ho, wo)
    mean = g.mean(axis=(2, 3, 4), keepdims=True)
    var = ((g - mean) ** 2).mean(axis=(2, 3, 4), keepdims=True)
    ybf = y_f32.astype(jnp.bfloat16).astype(jnp.float32)
    ybf = ybf.reshape(n, GN_GROUPS, cg, ho, wo)
    yn = ((ybf - mean) * lax.rsqrt(var + GN_EPS)).reshape(n, c, ho, wo)
    yn = yn * gamma[None, :, None, None] + beta[None, :, None, None]
    return jnp.where(yn >= 0, yn, LRELU_SLOPE * yn)


def down_block_reference(x_nchw, params, mask=None):
    x = x_nchw.astype(jnp.float32)
    n, _, h, w = x.shape
    if mask is None:
        mask = jnp.ones((n, h, w), jnp.float32)
    y1, m1 = _ref_partial_conv(x, mask, params["w1"], params["b1"], 1)
    y1 = _ref_gn_lrelu(y1, params["g1"], params["be1"])
    y2, m2 = _ref_partial_conv(y1, m1, params["w2"], params["b2"], 2)
    y2 = _ref_gn_lrelu(y2, params["g2"], params["be2"])
    return y2, m2[:, None]


if __name__ == "__main__":
    N, in_ch, out_ch, H, W = 2, 4, 16, 16, 16   # out_ch divisible by GroupNorm's 8 groups
    key = jax.random.PRNGKey(0)
    k = jax.random.split(key, 10)
    params = {
        "w1": jax.random.normal(k[0], (out_ch, in_ch, KH, KW), jnp.float32) * 0.1,
        "b1": jax.random.normal(k[1], (out_ch,), jnp.float32) * 0.1,
        "w2": jax.random.normal(k[2], (out_ch, out_ch, KH, KW), jnp.float32) * 0.05,
        "b2": jax.random.normal(k[3], (out_ch,), jnp.float32) * 0.1,
        "g1": 1.0 + 0.1 * jax.random.normal(k[4], (out_ch,), jnp.float32),
        "be1": 0.1 * jax.random.normal(k[5], (out_ch,), jnp.float32),
        "g2": 1.0 + 0.1 * jax.random.normal(k[6], (out_ch,), jnp.float32),
        "be2": 0.1 * jax.random.normal(k[7], (out_ch,), jnp.float32),
    }
    x = jax.random.normal(k[8], (N, in_ch, H, W), jnp.float32)
    mask = (jax.random.uniform(k[9], (N, H, W)) > 0.3).astype(jnp.float32)

    # max_tile_pixels=160 -> 2 row tiles on stage 1 at these toy shapes, exercising
    # the cross-tile GroupNorm statistics accumulation and the halo/ragged paths.
    fwd = jax.jit(functools.partial(down_block_forward, max_tile_pixels=160))
    y, m = fwd(x, params, mask)
    y = jax.block_until_ready(y)
    m = jax.block_until_ready(m)

    y_ref, m_ref = down_block_reference(x, params, mask)
    assert y.shape == (N, out_ch, H // 2, W // 2)
    assert m.shape == (N, 1, H // 2, W // 2)
    np.testing.assert_allclose(np.asarray(y), np.asarray(y_ref), rtol=5e-3, atol=5e-3)
    np.testing.assert_allclose(np.asarray(m), np.asarray(m_ref), rtol=1e-5, atol=1e-5)
    print("KERNEL_OK")
</pallas_src>

<mosaic_0001>
module attributes {stable_mosaic.version = 11 : i64} {
  func.func @_pconv_stats_kernel(%arg0: i32, %arg1: i32, %arg2: memref<1x1x1x4x198xbf16, #tpu.memory_space<vmem>>, %arg3: memref<1x1x2x144xf32, #tpu.memory_space<vmem>>, %arg4: memref<16x36xbf16, #tpu.memory_space<vmem>>, %arg5: memref<16x1xf32, #tpu.memory_space<vmem>>, %arg6: memref<1x1x16x144xbf16, #tpu.memory_space<vmem>>, %arg7: memref<1x16x1xf32, #tpu.memory_space<vmem>>, %arg8: memref<1x16x1xf32, #tpu.memory_space<vmem>>) attributes {dimension_semantics = [#tpu.dimension_semantics<parallel>, #tpu.dimension_semantics<arbitrary>], iteration_bounds = array<i64: 2, 2>, scalar_prefetch = 0 : i64, scratch_operands = 0 : i64, tpu.core_type = #tpu.core_type<tc>, window_params = [{transform_indices = @transform_0, window_bounds = array<i64: 1, 1, 1, 4, 198>}, {transform_indices = @transform_1, window_bounds = array<i64: 1, 1, 2, 144>}, {pipeline_mode = #tpu.pipeline_mode<synchronous>, transform_indices = @transform_2, window_bounds = array<i64: 16, 36>}, {pipeline_mode = #tpu.pipeline_mode<synchronous>, transform_indices = @transform_3, window_bounds = array<i64: 16, 1>}, {transform_indices = @transform_4, window_bounds = array<i64: 1, 1, 16, 144>}, {transform_indices = @transform_5, window_bounds = array<i64: 1, 16, 1>}, {transform_indices = @transform_6, window_bounds = array<i64: 1, 16, 1>}]} {
    %c0 = arith.constant 0 : index
    %c0_0 = arith.constant 0 : index
    %c0_1 = arith.constant 0 : index
    %c0_2 = arith.constant 0 : index
    %c0_3 = arith.constant 0 : index
    %0 = vector.load %arg2[%c0, %c0_0, %c0_1, %c0_2, %c0_3] : memref<1x1x1x4x198xbf16, #tpu.memory_space<vmem>>, vector<1x1x1x4x144xbf16>
    %1 = vector.shape_cast %0 : vector<1x1x1x4x144xbf16> to vector<4x144xbf16>
    %c0_4 = arith.constant 0 : index
    %c0_5 = arith.constant 0 : index
    %c0_6 = arith.constant 0 : index
    %c0_7 = arith.constant 0 : index
    %c1 = arith.constant 1 : index
    %2 = vector.load %arg2[%c0_4, %c0_5, %c0_6, %c0_7, %c1] : memref<1x1x1x4x198xbf16, #tpu.memory_space<vmem>>, vector<1x1x1x4x144xbf16>
    %3 = vector.shape_cast %2 : vector<1x1x1x4x144xbf16> to vector<4x144xbf16>
    %c0_8 = arith.constant 0 : index
    %c0_9 = arith.constant 0 : index
    %c0_10 = arith.constant 0 : index
    %c0_11 = arith.constant 0 : index
    %c2 = arith.constant 2 : index
    %4 = vector.load %arg2[%c0_8, %c0_9, %c0_10, %c0_11, %c2] : memref<1x1x1x4x198xbf16, #tpu.memory_space<vmem>>, vector<1x1x1x4x144xbf16>
    %5 = vector.shape_cast %4 : vector<1x1x1x4x144xbf16> to vector<4x144xbf16>
    %c0_12 = arith.constant 0 : index
    %c0_13 = arith.constant 0 : index
    %c0_14 = arith.constant 0 : index
    %c0_15 = arith.constant 0 : index
    %c18 = arith.constant 18 : index
    %6 = vector.load %arg2[%c0_12, %c0_13, %c0_14, %c0_15, %c18] : memref<1x1x1x4x198xbf16, #tpu.memory_space<vmem>>, vector<1x1x1x4x144xbf16>
    %7 = vector.shape_cast %6 : vector<1x1x1x4x144xbf16> to vector<4x144xbf16>
    %c0_16 = arith.constant 0 : index
    %c0_17 = arith.constant 0 : index
    %c0_18 = arith.constant 0 : index
    %c0_19 = arith.constant 0 : index
    %c19 = arith.constant 19 : index
    %8 = vector.load %arg2[%c0_16, %c0_17, %c0_18, %c0_19, %c19] : memref<1x1x1x4x198xbf16, #tpu.memory_space<vmem>>, vector<1x1x1x4x144xbf16>
    %9 = vector.shape_cast %8 : vector<1x1x1x4x144xbf16> to vector<4x144xbf16>
    %c0_20 = arith.constant 0 : index
    %c0_21 = arith.constant 0 : index
    %c0_22 = arith.constant 0 : index
    %c0_23 = arith.constant 0 : index
    %c20 = arith.constant 20 : index
    %10 = vector.load %arg2[%c0_20, %c0_21, %c0_22, %c0_23, %c20] : memref<1x1x1x4x198xbf16, #tpu.memory_space<vmem>>, vector<1x1x1x4x144xbf16>
    %11 = vector.shape_cast %10 : vector<1x1x1x4x144xbf16> to vector<4x144xbf16>
    %c0_24 = arith.constant 0 : index
    %c0_25 = arith.constant 0 : index
    %c0_26 = arith.constant 0 : index
    %c0_27 = arith.constant 0 : index
    %c36 = arith.constant 36 : index
    %12 = vector.load %arg2[%c0_24, %c0_25, %c0_26, %c0_27, %c36] : memref<1x1x1x4x198xbf16, #tpu.memory_space<vmem>>, vector<1x1x1x4x144xbf16>
    %13 = vector.shape_cast %12 : vector<1x1x1x4x144xbf16> to vector<4x144xbf16>
    %c0_28 = arith.constant 0 : index
    %c0_29 = arith.constant 0 : index
    %c0_30 = arith.constant 0 : index
    %c0_31 = arith.constant 0 : index
    %c37 = arith.constant 37 : index
    %14 = vector.load %arg2[%c0_28, %c0_29, %c0_30, %c0_31, %c37] : memref<1x1x1x4x198xbf16, #tpu.memory_space<vmem>>, vector<1x1x1x4x144xbf16>
    %15 = vector.shape_cast %14 : vector<1x1x1x4x144xbf16> to vector<4x144xbf16>
    %c0_32 = arith.constant 0 : index
    %c0_33 = arith.constant 0 : index
    %c0_34 = arith.constant 0 : index
    %c0_35 = arith.constant 0 : index
    %c38 = arith.constant 38 : index
    %16 = vector.load %arg2[%c0_32, %c0_33, %c0_34, %c0_35, %c38] : memref<1x1x1x4x198xbf16, #tpu.memory_space<vmem>>, vector<1x1x1x4x144xbf16>
    %17 = vector.shape_cast %16 : vector<1x1x1x4x144xbf16> to vector<4x144xbf16>
    %18 = tpu.concatenate %1, %3, %5, %7, %9, %11, %13, %15, %17 in 0 : vector<4x144xbf16>, vector<4x144xbf16>, vector<4x144xbf16>, vector<4x144xbf16>, vector<4x144xbf16>, vector<4x144xbf16>, vector<4x144xbf16>, vector<4x144xbf16>, vector<4x144xbf16> -> vector<36x144xbf16>
    %c0_36 = arith.constant 0 : index
    %c0_37 = arith.constant 0 : index
    %19 = vector.load %arg4[%c0_36, %c0_37] : memref<16x36xbf16, #tpu.memory_space<vmem>>, vector<16x36xbf16>
    %cst = arith.constant dense<0.000000e+00> : vector<16x144xf32>
    %20 = tpu.matmul %19, %18, %cst {dimension_numbers = #tpu.dot_dimension_numbers<[1], [0], [0], [1], [0, 0, 1, 1], [], []>} : vector<16x36xbf16>, vector<36x144xbf16>, vector<16x144xf32> -> vector<16x144xf32>
    %c0_38 = arith.constant 0 : index
    %c0_39 = arith.constant 0 : index
    %c0_40 = arith.constant 0 : index
    %c0_41 = arith.constant 0 : index
    %21 = vector.load %arg3[%c0_38, %c0_39, %c0_40, %c0_41] : memref<1x1x2x144xf32, #tpu.memory_space<vmem>>, vector<1x1x1x144xf32>
    %22 = vector.shape_cast %21 : vector<1x1x1x144xf32> to vector<1x144xf32>
    %c0_42 = arith.constant 0 : index
    %c0_43 = arith.constant 0 : index
    %c1_44 = arith.constant 1 : index
    %c0_45 = arith.constant 0 : index
    %23 = vector.load %arg3[%c0_42, %c0_43, %c1_44, %c0_45] : memref<1x1x2x144xf32, #tpu.memory_space<vmem>>, vector<1x1x1x144xf32>
    %24 = vector.shape_cast %23 : vector<1x1x1x144xf32> to vector<1x144xf32>
    %25 = vector.broadcast %22 : vector<1x144xf32> to vector<16x144xf32>
    %26 = arith.mulf %20, %25 : vector<16x144xf32>
    %c0_46 = arith.constant 0 : index
    %c0_47 = arith.constant 0 : index
    %27 = vector.load %arg5[%c0_46, %c0_47] : memref<16x1xf32, #tpu.memory_space<vmem>>, vector<16x1xf32>
    %28 = vector.broadcast %27 : vector<16x1xf32> to vector<16x144xf32>
    %29 = vector.broadcast %24 : vector<1x144xf32> to vector<16x144xf32>
    %30 = arith.mulf %28, %29 : vector<16x144xf32>
    %31 = arith.addf %26, %30 : vector<16x144xf32>
    %32 = arith.truncf %31 : vector<16x144xf32> to vector<16x144xbf16>
    %c0_48 = arith.constant 0 : index
    %c0_49 = arith.constant 0 : index
    %c0_50 = arith.constant 0 : index
    %c0_51 = arith.constant 0 : index
    %33 = vector.load %arg6[%c0_48, %c0_49, %c0_50, %c0_51] : memref<1x1x16x144xbf16, #tpu.memory_space<vmem>>, vector<1x1x16x144xbf16>
    %34 = vector.shape_cast %33 : vector<1x1x16x144xbf16> to vector<16x144xbf16>
    %35 = vector.shape_cast %32 : vector<16x144xbf16> to vector<1x1x16x144xbf16>
    tpu.vector_store %arg6[%c0_48, %c0_49, %c0_50, %c0_51], %35 {strides = array<i32>} : memref<1x1x16x144xbf16, #tpu.memory_space<vmem>>, vector<1x1x16x144xbf16>,
    %cst_52 = arith.constant dense<0.000000e+00> : vector<16xf32>
    %36 = vector.multi_reduction <add>, %31, %cst_52 [1] : vector<16x144xf32> to vector<16xf32>
    %37 = vector.shape_cast %36 : vector<16xf32> to vector<16x1xf32>
    %38 = arith.mulf %31, %31 : vector<16x144xf32>
    %cst_53 = arith.constant dense<0.000000e+00> : vector<16xf32>
    %39 = vector.multi_reduction <add>, %38, %cst_53 [1] : vector<16x144xf32> to vector<16xf32>
    %40 = vector.shape_cast %39 : vector<16xf32> to vector<16x1xf32>
    %c0_i32 = arith.constant 0 : i32
    %41 = arith.cmpi eq, %arg1, %c0_i32 : i32
    %42 = arith.extui %41 : i1 to i32
    %c0_i32_54 = arith.constant 0 : i32
    %43 = arith.cmpi ne, %42, %c0_i32_54 : i32
    scf.if %43 {
      %cst_67 = arith.constant 0.000000e+00 : f32
      %56 = vector.broadcast %cst_67 : f32 to vector<16x1xf32>
      %c0_68 = arith.constant 0 : index
      %c0_69 = arith.constant 0 : index
      %c0_70 = arith.constant 0 : index
      %57 = vector.load %arg7[%c0_68, %c0_69, %c0_70] : memref<1x16x1xf32, #tpu.memory_space<vmem>>, vector<1x16x1xf32>
      %58 = vector.shape_cast %57 : vector<1x16x1xf32> to vector<16x1xf32>
      %59 = vector.shape_cast %56 : vector<16x1xf32> to vector<1x16x1xf32>
      tpu.vector_store %arg7[%c0_68, %c0_69, %c0_70], %59 {strides = array<i32>} : memref<1x16x1xf32, #tpu.memory_space<vmem>>, vector<1x16x1xf32>,
      %cst_71 = arith.constant 0.000000e+00 : f32
      %60 = vector.broadcast %cst_71 : f32 to vector<16x1xf32>
      %c0_72 = arith.constant 0 : index
      %c0_73 = arith.constant 0 : index
      %c0_74 = arith.constant 0 : index
      %61 = vector.load %arg8[%c0_72, %c0_73, %c0_74] : memref<1x16x1xf32, #tpu.memory_space<vmem>>, vector<1x16x1xf32>
      %62 = vector.shape_cast %61 : vector<1x16x1xf32> to vector<16x1xf32>
      %63 = vector.shape_cast %60 : vector<16x1xf32> to vector<1x16x1xf32>
      tpu.vector_store %arg8[%c0_72, %c0_73, %c0_74], %63 {strides = array<i32>} : memref<1x16x1xf32, #tpu.memory_space<vmem>>, vector<1x16x1xf32>,
    } else {
    }
    %c0_55 = arith.constant 0 : index
    %c0_56 = arith.constant 0 : index
    %c0_57 = arith.constant 0 : index
    %44 = vector.load %arg7[%c0_55, %c0_56, %c0_57] : memref<1x16x1xf32, #tpu.memory_space<vmem>>, vector<1x16x1xf32>
    %45 = vector.shape_cast %44 : vector<1x16x1xf32> to vector<16x1xf32>
    %46 = arith.addf %45, %37 : vector<16x1xf32>
    %c0_58 = arith.constant 0 : index
    %c0_59 = arith.constant 0 : index
    %c0_60 = arith.constant 0 : index
    %47 = vector.load %arg7[%c0_58, %c0_59, %c0_60] : memref<1x16x1xf32, #tpu.memory_space<vmem>>, vector<1x16x1xf32>
    %48 = vector.shape_cast %47 : vector<1x16x1xf32> to vector<16x1xf32>
    %49 = vector.shape_cast %46 : vector<16x1xf32> to vector<1x16x1xf32>
    tpu.vector_store %arg7[%c0_58, %c0_59, %c0_60], %49 {strides = array<i32>} : memref<1x16x1xf32, #tpu.memory_space<vmem>>, vector<1x16x1xf32>,
    %c0_61 = arith.constant 0 : index
    %c0_62 = arith.constant 0 : index
    %c0_63 = arith.constant 0 : index
    %50 = vector.load %arg8[%c0_61, %c0_62, %c0_63] : memref<1x16x1xf32, #tpu.memory_space<vmem>>, vector<1x16x1xf32>
    %51 = vector.shape_cast %50 : vector<1x16x1xf32> to vector<16x1xf32>
    %52 = arith.addf %51, %40 : vector<16x1xf32>
    %c0_64 = arith.constant 0 : index
    %c0_65 = arith.constant 0 : index
    %c0_66 = arith.constant 0 : index
    %53 = vector.load %arg8[%c0_64, %c0_65, %c0_66] : memref<1x16x1xf32, #tpu.memory_space<vmem>>, vector<1x16x1xf32>
    %54 = vector.shape_cast %53 : vector<1x16x1xf32> to vector<16x1xf32>
    %55 = vector.shape_cast %52 : vector<16x1xf32> to vector<1x16x1xf32>
    tpu.vector_store %arg8[%c0_64, %c0_65, %c0_66], %55 {strides = array<i32>} : memref<1x16x1xf32, #tpu.memory_space<vmem>>, vector<1x16x1xf32>,
    return
  }
  func.func @transform_0(%arg0: i32, %arg1: i32) -> (i32, i32, i32, i32, i32) {
    %c0_i32 = arith.constant 0 : i32
    %c0_i32_0 = arith.constant 0 : i32
    %c0_i32_1 = arith.constant 0 : i32
    %c0_i32_2 = arith.constant 0 : i32
    return %arg0, %arg1, %c0_i32, %c0_i32_0, %c0_i32_1 : i32, i32, i32, i32, i32
  }
  func.func @transform_1(%arg0: i32, %arg1: i32) -> (i32, i32, i32, i32) {
    %c0_i32 = arith.constant 0 : i32
    %c0_i32_0 = arith.constant 0 : i32
    %c0_i32_1 = arith.constant 0 : i32
    return %arg0, %arg1, %c0_i32, %c0_i32_0 : i32, i32, i32, i32
  }
  func.func @transform_2(%arg0: i32, %arg1: i32) -> (i32, i32) {
    %c0_i32 = arith.constant 0 : i32
    %c0_i32_0 = arith.constant 0 : i32
    %c0_i32_1 = arith.constant 0 : i32
    return %c0_i32, %c0_i32_0 : i32, i32
  }
  func.func @transform_3(%arg0: i32, %arg1: i32) -> (i32, i32) {
    %c0_i32 = arith.constant 0 : i32
    %c0_i32_0 = arith.constant 0 : i32
    %c0_i32_1 = arith.constant 0 : i32
    return %c0_i32, %c0_i32_0 : i32, i32
  }
  func.func @transform_4(%arg0: i32, %arg1: i32) -> (i32, i32, i32, i32) {
    %c0_i32 = arith.constant 0 : i32
    %c0_i32_0 = arith.constant 0 : i32
    %c0_i32_1 = arith.constant 0 : i32
    return %arg0, %arg1, %c0_i32, %c0_i32_0 : i32, i32, i32, i32
  }
  func.func @transform_5(%arg0: i32, %arg1: i32) -> (i32, i32, i32) {
    %c0_i32 = arith.constant 0 : i32
    %c0_i32_0 = arith.constant 0 : i32
    %c0_i32_1 = arith.constant 0 : i32
    return %arg0, %c0_i32, %c0_i32_0 : i32, i32, i32
  }
  func.func @transform_6(%arg0: i32, %arg1: i32) -> (i32, i32, i32) {
    %c0_i32 = arith.constant 0 : i32
    %c0_i32_0 = arith.constant 0 : i32
    %c0_i32_1 = arith.constant 0 : i32
    return %arg0, %c0_i32, %c0_i32_0 : i32, i32, i32
  }
}

module attributes {stable_mosaic.version = 11 : i64} {
  func.func @_gn_act_kernel(%arg0: i32, %arg1: i32, %arg2: memref<1x1x16x144xbf16, #tpu.memory_space<vmem>>, %arg3: memref<1x16x1xf32, #tpu.memory_space<vmem>>, %arg4: memref<1x16x1xf32, #tpu.memory_space<vmem>>, %arg5: memref<1x1x2x144xf32, #tpu.memory_space<vmem>>, %arg6: memref<1x1x16x144xbf16, #tpu.memory_space<vmem>>) attributes {dimension_semantics = [#tpu.dimension_semantics<parallel>, #tpu.dimension_semantics<parallel>], iteration_bounds = array<i64: 2, 2>, scalar_prefetch = 0 : i64, scratch_operands = 0 : i64, tpu.core_type = #tpu.core_type<tc>, window_params = [{transform_indices = @transform_0, window_bounds = array<i64: 1, 1, 16, 144>}, {transform_indices = @transform_1, window_bounds = array<i64: 1, 16, 1>}, {transform_indices = @transform_2, window_bounds = array<i64: 1, 16, 1>}, {transform_indices = @transform_3, window_bounds = array<i64: 1, 1, 2, 144>}, {transform_indices = @transform_4, window_bounds = array<i64: 1, 1, 16, 144>}]} {
    %c0 = arith.constant 0 : index
    %c0_0 = arith.constant 0 : index
    %c0_1 = arith.constant 0 : index
    %c0_2 = arith.constant 0 : index
    %0 = vector.load %arg2[%c0, %c0_0, %c0_1, %c0_2] : memref<1x1x16x144xbf16, #tpu.memory_space<vmem>>, vector<1x1x16x144xbf16>
    %1 = vector.shape_cast %0 : vector<1x1x16x144xbf16> to vector<16x144xbf16>
    %2 = arith.extf %1 : vector<16x144xbf16> to vector<16x144xf32>
    %c0_3 = arith.constant 0 : index
    %c0_4 = arith.constant 0 : index
    %c0_5 = arith.constant 0 : index
    %3 = vector.load %arg3[%c0_3, %c0_4, %c0_5] : memref<1x16x1xf32, #tpu.memory_space<vmem>>, vector<1x16x1xf32>
    %4 = vector.shape_cast %3 : vector<1x16x1xf32> to vector<16x1xf32>
    %5 = vector.broadcast %4 : vector<16x1xf32> to vector<16x144xf32>
    %6 = arith.mulf %2, %5 : vector<16x144xf32>
    %c0_6 = arith.constant 0 : index
    %c0_7 = arith.constant 0 : index
    %c0_8 = arith.constant 0 : index
    %7 = vector.load %arg4[%c0_6, %c0_7, %c0_8] : memref<1x16x1xf32, #tpu.memory_space<vmem>>, vector<1x16x1xf32>
    %8 = vector.shape_cast %7 : vector<1x16x1xf32> to vector<16x1xf32>
    %9 = vector.broadcast %8 : vector<16x1xf32> to vector<16x144xf32>
    %10 = arith.addf %6, %9 : vector<16x144xf32>
    %cst = arith.constant 0.000000e+00 : f32
    %11 = vector.broadcast %cst : f32 to vector<16x144xf32>
    %12 = arith.cmpf oge, %10, %11 : vector<16x144xf32>
    %cst_9 = arith.constant 0.00999999977 : f32
    %13 = vector.broadcast %cst_9 : f32 to vector<16x144xf32>
    %14 = arith.mulf %13, %10 : vector<16x144xf32>
    %15 = arith.select %12, %10, %14 : vector<16x144xi1>, vector<16x144xf32>
    %c0_10 = arith.constant 0 : index
    %c0_11 = arith.constant 0 : index
    %c1 = arith.constant 1 : index
    %c0_12 = arith.constant 0 : index
    %16 = vector.load %arg5[%c0_10, %c0_11, %c1, %c0_12] : memref<1x1x2x144xf32, #tpu.memory_space<vmem>>, vector<1x1x1x144xf32>
    %17 = vector.shape_cast %16 : vector<1x1x1x144xf32> to vector<1x144xf32>
    %18 = vector.broadcast %17 : vector<1x144xf32> to vector<16x144xf32>
    %19 = arith.mulf %15, %18 : vector<16x144xf32>
    %20 = arith.truncf %19 : vector<16x144xf32> to vector<16x144xbf16>
    %c0_13 = arith.constant 0 : index
    %c0_14 = arith.constant 0 : index
    %c0_15 = arith.constant 0 : index
    %c0_16 = arith.constant 0 : index
    %21 = vector.load %arg6[%c0_13, %c0_14, %c0_15, %c0_16] : memref<1x1x16x144xbf16, #tpu.memory_space<vmem>>, vector<1x1x16x144xbf16>
    %22 = vector.shape_cast %21 : vector<1x1x16x144xbf16> to vector<16x144xbf16>
    %23 = vector.shape_cast %20 : vector<16x144xbf16> to vector<1x1x16x144xbf16>
    tpu.vector_store %arg6[%c0_13, %c0_14, %c0_15, %c0_16], %23 {strides = array<i32>} : memref<1x1x16x144xbf16, #tpu.memory_space<vmem>>, vector<1x1x16x144xbf16>,
    return
  }
  func.func @transform_0(%arg0: i32, %arg1: i32) -> (i32, i32, i32, i32) {
    %c0_i32 = arith.constant 0 : i32
    %c0_i32_0 = arith.constant 0 : i32
    %c0_i32_1 = arith.constant 0 : i32
    return %arg0, %arg1, %c0_i32, %c0_i32_0 : i32, i32, i32, i32
  }
  func.func @transform_1(%arg0: i32, %arg1: i32) -> (i32, i32, i32) {
    %c0_i32 = arith.constant 0 : i32
    %c0_i32_0 = arith.constant 0 : i32
    %c0_i32_1 = arith.constant 0 : i32
    return %arg0, %c0_i32, %c0_i32_0 : i32, i32, i32
  }
  func.func @transform_2(%arg0: i32, %arg1: i32) -> (i32, i32, i32) {
    %c0_i32 = arith.constant 0 : i32
    %c0_i32_0 = arith.constant 0 : i32
    %c0_i32_1 = arith.constant 0 : i32
    return %arg0, %c0_i32, %c0_i32_0 : i32, i32, i32
  }
  func.func @transform_3(%arg0: i32, %arg1: i32) -> (i32, i32, i32, i32) {
    %c0_i32 = arith.constant 0 : i32
    %c0_i32_0 = arith.constant 0 : i32
    %c0_i32_1 = arith.constant 0 : i32
    return %arg0, %arg1, %c0_i32, %c0_i32_0 : i32, i32, i32, i32
  }
  func.func @transform_4(%arg0: i32, %arg1: i32) -> (i32, i32, i32, i32) {
    %c0_i32 = arith.constant 0 : i32
    %c0_i32_0 = arith.constant 0 : i32
    %c0_i32_1 = arith.constant 0 : i32
    return %arg0, %arg1, %c0_i32, %c0_i32_0 : i32, i32, i32, i32
  }
}

module attributes {stable_mosaic.version = 11 : i64} {
  func.func @_gn_act_kernel(%arg0: i32, %arg1: i32, %arg2: memref<1x1x16x72xbf16, #tpu.memory_space<vmem>>, %arg3: memref<1x16x1xf32, #tpu.memory_space<vmem>>, %arg4: memref<1x16x1xf32, #tpu.memory_space<vmem>>, %arg5: memref<1x1x16x72xf32, #tpu.memory_space<vmem>>) attributes {dimension_semantics = [#tpu.dimension_semantics<parallel>, #tpu.dimension_semantics<parallel>], iteration_bounds = array<i64: 2, 1>, scalar_prefetch = 0 : i64, scratch_operands = 0 : i64, tpu.core_type = #tpu.core_type<tc>, window_params = [{transform_indices = @transform_0, window_bounds = array<i64: 1, 1, 16, 72>}, {transform_indices = @transform_1, window_bounds = array<i64: 1, 16, 1>}, {transform_indices = @transform_2, window_bounds = array<i64: 1, 16, 1>}, {transform_indices = @transform_3, window_bounds = array<i64: 1, 1, 16, 72>}]} {
    %c0 = arith.constant 0 : index
    %c0_0 = arith.constant 0 : index
    %c0_1 = arith.constant 0 : index
    %c0_2 = arith.constant 0 : index
    %0 = vector.load %arg2[%c0, %c0_0, %c0_1, %c0_2] : memref<1x1x16x72xbf16, #tpu.memory_space<vmem>>, vector<1x1x16x72xbf16>
    %1 = vector.shape_cast %0 : vector<1x1x16x72xbf16> to vector<16x72xbf16>
    %2 = arith.extf %1 : vector<16x72xbf16> to vector<16x72xf32>
    %c0_3 = arith.constant 0 : index
    %c0_4 = arith.constant 0 : index
    %c0_5 = arith.constant 0 : index
    %3 = vector.load %arg3[%c0_3, %c0_4, %c0_5] : memref<1x16x1xf32, #tpu.memory_space<vmem>>, vector<1x16x1xf32>
    %4 = vector.shape_cast %3 : vector<1x16x1xf32> to vector<16x1xf32>
    %5 = vector.broadcast %4 : vector<16x1xf32> to vector<16x72xf32>
    %6 = arith.mulf %2, %5 : vector<16x72xf32>
    %c0_6 = arith.constant 0 : index
    %c0_7 = arith.constant 0 : index
    %c0_8 = arith.constant 0 : index
    %7 = vector.load %arg4[%c0_6, %c0_7, %c0_8] : memref<1x16x1xf32, #tpu.memory_space<vmem>>, vector<1x16x1xf32>
    %8 = vector.shape_cast %7 : vector<1x16x1xf32> to vector<16x1xf32>
    %9 = vector.broadcast %8 : vector<16x1xf32> to vector<16x72xf32>
    %10 = arith.addf %6, %9 : vector<16x72xf32>
    %cst = arith.constant 0.000000e+00 : f32
    %11 = vector.broadcast %cst : f32 to vector<16x72xf32>
    %12 = arith.cmpf oge, %10, %11 : vector<16x72xf32>
    %cst_9 = arith.constant 0.00999999977 : f32
    %13 = vector.broadcast %cst_9 : f32 to vector<16x72xf32>
    %14 = arith.mulf %13, %10 : vector<16x72xf32>
    %15 = arith.select %12, %10, %14 : vector<16x72xi1>, vector<16x72xf32>
    %c0_10 = arith.constant 0 : index
    %c0_11 = arith.constant 0 : index
    %c0_12 = arith.constant 0 : index
    %c0_13 = arith.constant 0 : index
    %16 = vector.load %arg5[%c0_10, %c0_11, %c0_12, %c0_13] : memref<1x1x16x72xf32, #tpu.memory_space<vmem>>, vector<1x1x16x72xf32>
    %17 = vector.shape_cast %16 : vector<1x1x16x72xf32> to vector<16x72xf32>
    %18 = vector.shape_cast %15 : vector<16x72xf32> to vector<1x1x16x72xf32>
    tpu.vector_store %arg5[%c0_10, %c0_11, %c0_12, %c0_13], %18 {strides = array<i32>} : memref<1x1x16x72xf32, #tpu.memory_space<vmem>>, vector<1x1x16x72xf32>,
    return
  }
  func.func @transform_0(%arg0: i32, %arg1: i32) -> (i32, i32, i32, i32) {
    %c0_i32 = arith.constant 0 : i32
    %c0_i32_0 = arith.constant 0 : i32
    %c0_i32_1 = arith.constant 0 : i32
    return %arg0, %arg1, %c0_i32, %c0_i32_0 : i32, i32, i32, i32
  }
  func.func @transform_1(%arg0: i32, %arg1: i32) -> (i32, i32, i32) {
    %c0_i32 = arith.constant 0 : i32
    %c0_i32_0 = arith.constant 0 : i32
    %c0_i32_1 = arith.constant 0 : i32
    return %arg0, %c0_i32, %c0_i32_0 : i32, i32, i32
  }
  func.func @transform_2(%arg0: i32, %arg1: i32) -> (i32, i32, i32) {
    %c0_i32 = arith.constant 0 : i32
    %c0_i32_0 = arith.constant 0 : i32
    %c0_i32_1 = arith.constant 0 : i32
    return %arg0, %c0_i32, %c0_i32_0 : i32, i32, i32
  }
  func.func @transform_3(%arg0: i32, %arg1: i32) -> (i32, i32, i32, i32) {
    %c0_i32 = arith.constant 0 : i32
    %c0_i32_0 = arith.constant 0 : i32
    %c0_i32_1 = arith.constant 0 : i32
    return %arg0, %arg1, %c0_i32, %c0_i32_0 : i32, i32, i32, i32
  }
}

module attributes {stable_mosaic.version = 11 : i64} {
  func.func @_pconv_stats_kernel(%arg0: i32, %arg1: i32, %arg2: memref<1x1x4x16x90xbf16, #tpu.memory_space<vmem>>, %arg3: memref<1x1x2x72xf32, #tpu.memory_space<vmem>>, %arg4: memref<16x144xbf16, #tpu.memory_space<vmem>>, %arg5: memref<16x1xf32, #tpu.memory_space<vmem>>, %arg6: memref<1x1x16x72xbf16, #tpu.memory_space<vmem>>, %arg7: memref<1x16x1xf32, #tpu.memory_space<vmem>>, %arg8: memref<1x16x1xf32, #tpu.memory_space<vmem>>) attributes {dimension_semantics = [#tpu.dimension_semantics<parallel>, #tpu.dimension_semantics<arbitrary>], iteration_bounds = array<i64: 2, 1>, scalar_prefetch = 0 : i64, scratch_operands = 0 : i64, tpu.core_type = #tpu.core_type<tc>, window_params = [{transform_indices = @transform_0, window_bounds = array<i64: 1, 1, 4, 16, 90>}, {transform_indices = @transform_1, window_bounds = array<i64: 1, 1, 2, 72>}, {pipeline_mode = #tpu.pipeline_mode<synchronous>, transform_indices = @transform_2, window_bounds = array<i64: 16, 144>}, {pipeline_mode = #tpu.pipeline_mode<synchronous>, transform_indices = @transform_3, window_bounds = array<i64: 16, 1>}, {transform_indices = @transform_4, window_bounds = array<i64: 1, 1, 16, 72>}, {transform_indices = @transform_5, window_bounds = array<i64: 1, 16, 1>}, {transform_indices = @transform_6, window_bounds = array<i64: 1, 16, 1>}]} {
    %c0 = arith.constant 0 : index
    %c0_0 = arith.constant 0 : index
    %c0_1 = arith.constant 0 : index
    %c0_2 = arith.constant 0 : index
    %c0_3 = arith.constant 0 : index
    %0 = vector.load %arg2[%c0, %c0_0, %c0_1, %c0_2, %c0_3] : memref<1x1x4x16x90xbf16, #tpu.memory_space<vmem>>, vector<1x1x1x16x72xbf16>
    %1 = vector.shape_cast %0 : vector<1x1x1x16x72xbf16> to vector<16x72xbf16>
    %c0_4 = arith.constant 0 : index
    %c0_5 = arith.constant 0 : index
    %c1 = arith.constant 1 : index
    %c0_6 = arith.constant 0 : index
    %c0_7 = arith.constant 0 : index
    %2 = vector.load %arg2[%c0_4, %c0_5, %c1, %c0_6, %c0_7] : memref<1x1x4x16x90xbf16, #tpu.memory_space<vmem>>, vector<1x1x1x16x72xbf16>
    %3 = vector.shape_cast %2 : vector<1x1x1x16x72xbf16> to vector<16x72xbf16>
    %c0_8 = arith.constant 0 : index
    %c0_9 = arith.constant 0 : index
    %c0_10 = arith.constant 0 : index
    %c0_11 = arith.constant 0 : index
    %c1_12 = arith.constant 1 : index
    %4 = vector.load %arg2[%c0_8, %c0_9, %c0_10, %c0_11, %c1_12] : memref<1x1x4x16x90xbf16, #tpu.memory_space<vmem>>, vector<1x1x1x16x72xbf16>
    %5 = vector.shape_cast %4 : vector<1x1x1x16x72xbf16> to vector<16x72xbf16>
    %c0_13 = arith.constant 0 : index
    %c0_14 = arith.constant 0 : index
    %c2 = arith.constant 2 : index
    %c0_15 = arith.constant 0 : index
    %c0_16 = arith.constant 0 : index
    %6 = vector.load %arg2[%c0_13, %c0_14, %c2, %c0_15, %c0_16] : memref<1x1x4x16x90xbf16, #tpu.memory_space<vmem>>, vector<1x1x1x16x72xbf16>
    %7 = vector.shape_cast %6 : vector<1x1x1x16x72xbf16> to vector<16x72xbf16>
    %c0_17 = arith.constant 0 : index
    %c0_18 = arith.constant 0 : index
    %c3 = arith.constant 3 : index
    %c0_19 = arith.constant 0 : index
    %c0_20 = arith.constant 0 : index
    %8 = vector.load %arg2[%c0_17, %c0_18, %c3, %c0_19, %c0_20] : memref<1x1x4x16x90xbf16, #tpu.memory_space<vmem>>, vector<1x1x1x16x72xbf16>
    %9 = vector.shape_cast %8 : vector<1x1x1x16x72xbf16> to vector<16x72xbf16>
    %c0_21 = arith.constant 0 : index
    %c0_22 = arith.constant 0 : index
    %c2_23 = arith.constant 2 : index
    %c0_24 = arith.constant 0 : index
    %c1_25 = arith.constant 1 : index
    %10 = vector.load %arg2[%c0_21, %c0_22, %c2_23, %c0_24, %c1_25] : memref<1x1x4x16x90xbf16, #tpu.memory_space<vmem>>, vector<1x1x1x16x72xbf16>
    %11 = vector.shape_cast %10 : vector<1x1x1x16x72xbf16> to vector<16x72xbf16>
    %c0_26 = arith.constant 0 : index
    %c0_27 = arith.constant 0 : index
    %c0_28 = arith.constant 0 : index
    %c0_29 = arith.constant 0 : index
    %c9 = arith.constant 9 : index
    %12 = vector.load %arg2[%c0_26, %c0_27, %c0_28, %c0_29, %c9] : memref<1x1x4x16x90xbf16, #tpu.memory_space<vmem>>, vector<1x1x1x16x72xbf16>
    %13 = vector.shape_cast %12 : vector<1x1x1x16x72xbf16> to vector<16x72xbf16>
    %c0_30 = arith.constant 0 : index
    %c0_31 = arith.constant 0 : index
    %c1_32 = arith.constant 1 : index
    %c0_33 = arith.constant 0 : index
    %c9_34 = arith.constant 9 : index
    %14 = vector.load %arg2[%c0_30, %c0_31, %c1_32, %c0_33, %c9_34] : memref<1x1x4x16x90xbf16, #tpu.memory_space<vmem>>, vector<1x1x1x16x72xbf16>
    %15 = vector.shape_cast %14 : vector<1x1x1x16x72xbf16> to vector<16x72xbf16>
    %c0_35 = arith.constant 0 : index
    %c0_36 = arith.constant 0 : index
    %c0_37 = arith.constant 0 : index
    %c0_38 = arith.constant 0 : index
    %c10 = arith.constant 10 : index
    %16 = vector.load %arg2[%c0_35, %c0_36, %c0_37, %c0_38, %c10] : memref<1x1x4x16x90xbf16, #tpu.memory_space<vmem>>, vector<1x1x1x16x72xbf16>
    %17 = vector.shape_cast %16 : vector<1x1x1x16x72xbf16> to vector<16x72xbf16>
    %18 = tpu.concatenate %1, %3, %5, %7, %9, %11, %13, %15, %17 in 0 : vector<16x72xbf16>, vector<16x72xbf16>, vector<16x72xbf16>, vector<16x72xbf16>, vector<16x72xbf16>, vector<16x72xbf16>, vector<16x72xbf16>, vector<16x72xbf16>, vector<16x72xbf16> -> vector<144x72xbf16>
    %c0_39 = arith.constant 0 : index
    %c0_40 = arith.constant 0 : index
    %19 = vector.load %arg4[%c0_39, %c0_40] : memref<16x144xbf16, #tpu.memory_space<vmem>>, vector<16x144xbf16>
    %cst = arith.constant dense<0.000000e+00> : vector<16x72xf32>
    %20 = tpu.matmul %19, %18, %cst {dimension_numbers = #tpu.dot_dimension_numbers<[1], [0], [0], [1], [0, 0, 1, 1], [], []>} : vector<16x144xbf16>, vector<144x72xbf16>, vector<16x72xf32> -> vector<16x72xf32>
    %c0_41 = arith.constant 0 : index
    %c0_42 = arith.constant 0 : index
    %c0_43 = arith.constant 0 : index
    %c0_44 = arith.constant 0 : index
    %21 = vector.load %arg3[%c0_41, %c0_42, %c0_43, %c0_44] : memref<1x1x2x72xf32, #tpu.memory_space<vmem>>, vector<1x1x1x72xf32>
    %22 = vector.shape_cast %21 : vector<1x1x1x72xf32> to vector<1x72xf32>
    %c0_45 = arith.constant 0 : index
    %c0_46 = arith.constant 0 : index
    %c1_47 = arith.constant 1 : index
    %c0_48 = arith.constant 0 : index
    %23 = vector.load %arg3[%c0_45, %c0_46, %c1_47, %c0_48] : memref<1x1x2x72xf32, #tpu.memory_space<vmem>>, vector<1x1x1x72xf32>
    %24 = vector.shape_cast %23 : vector<1x1x1x72xf32> to vector<1x72xf32>
    %25 = vector.broadcast %22 : vector<1x72xf32> to vector<16x72xf32>
    %26 = arith.mulf %20, %25 : vector<16x72xf32>
    %c0_49 = arith.constant 0 : index
    %c0_50 = arith.constant 0 : index
    %27 = vector.load %arg5[%c0_49, %c0_50] : memref<16x1xf32, #tpu.memory_space<vmem>>, vector<16x1xf32>
    %28 = vector.broadcast %27 : vector<16x1xf32> to vector<16x72xf32>
    %29 = vector.broadcast %24 : vector<1x72xf32> to vector<16x72xf32>
    %30 = arith.mulf %28, %29 : vector<16x72xf32>
    %31 = arith.addf %26, %30 : vector<16x72xf32>
    %32 = arith.truncf %31 : vector<16x72xf32> to vector<16x72xbf16>
    %c0_51 = arith.constant 0 : index
    %c0_52 = arith.constant 0 : index
    %c0_53 = arith.constant 0 : index
    %c0_54 = arith.constant 0 : index
    %33 = vector.load %arg6[%c0_51, %c0_52, %c0_53, %c0_54] : memref<1x1x16x72xbf16, #tpu.memory_space<vmem>>, vector<1x1x16x72xbf16>
    %34 = vector.shape_cast %33 : vector<1x1x16x72xbf16> to vector<16x72xbf16>
    %35 = vector.shape_cast %32 : vector<16x72xbf16> to vector<1x1x16x72xbf16>
    tpu.vector_store %arg6[%c0_51, %c0_52, %c0_53, %c0_54], %35 {strides = array<i32>} : memref<1x1x16x72xbf16, #tpu.memory_space<vmem>>, vector<1x1x16x72xbf16>,
    %cst_55 = arith.constant dense<0.000000e+00> : vector<16xf32>
    %36 = vector.multi_reduction <add>, %31, %cst_55 [1] : vector<16x72xf32> to vector<16xf32>
    %37 = vector.shape_cast %36 : vector<16xf32> to vector<16x1xf32>
    %38 = arith.mulf %31, %31 : vector<16x72xf32>
    %cst_56 = arith.constant dense<0.000000e+00> : vector<16xf32>
    %39 = vector.multi_reduction <add>, %38, %cst_56 [1] : vector<16x72xf32> to vector<16xf32>
    %40 = vector.shape_cast %39 : vector<16xf32> to vector<16x1xf32>
    %c0_i32 = arith.constant 0 : i32
    %41 = arith.cmpi eq, %arg1, %c0_i32 : i32
    %42 = arith.extui %41 : i1 to i32
    %c0_i32_57 = arith.constant 0 : i32
    %43 = arith.cmpi ne, %42, %c0_i32_57 : i32
    scf.if %43 {
      %cst_70 = arith.constant 0.000000e+00 : f32
      %56 = vector.broadcast %cst_70 : f32 to vector<16x1xf32>
      %c0_71 = arith.constant 0 : index
      %c0_72 = arith.constant 0 : index
      %c0_73 = arith.constant 0 : index
      %57 = vector.load %arg7[%c0_71, %c0_72, %c0_73] : memref<1x16x1xf32, #tpu.memory_space<vmem>>, vector<1x16x1xf32>
      %58 = vector.shape_cast %57 : vector<1x16x1xf32> to vector<16x1xf32>
      %59 = vector.shape_cast %56 : vector<16x1xf32> to vector<1x16x1xf32>
      tpu.vector_store %arg7[%c0_71, %c0_72, %c0_73], %59 {strides = array<i32>} : memref<1x16x1xf32, #tpu.memory_space<vmem>>, vector<1x16x1xf32>,
      %cst_74 = arith.constant 0.000000e+00 : f32
      %60 = vector.broadcast %cst_74 : f32 to vector<16x1xf32>
      %c0_75 = arith.constant 0 : index
      %c0_76 = arith.constant 0 : index
      %c0_77 = arith.constant 0 : index
      %61 = vector.load %arg8[%c0_75, %c0_76, %c0_77] : memref<1x16x1xf32, #tpu.memory_space<vmem>>, vector<1x16x1xf32>
      %62 = vector.shape_cast %61 : vector<1x16x1xf32> to vector<16x1xf32>
      %63 = vector.shape_cast %60 : vector<16x1xf32> to vector<1x16x1xf32>
      tpu.vector_store %arg8[%c0_75, %c0_76, %c0_77], %63 {strides = array<i32>} : memref<1x16x1xf32, #tpu.memory_space<vmem>>, vector<1x16x1xf32>,
    } else {
    }
    %c0_58 = arith.constant 0 : index
    %c0_59 = arith.constant 0 : index
    %c0_60 = arith.constant 0 : index
    %44 = vector.load %arg7[%c0_58, %c0_59, %c0_60] : memref<1x16x1xf32, #tpu.memory_space<vmem>>, vector<1x16x1xf32>
    %45 = vector.shape_cast %44 : vector<1x16x1xf32> to vector<16x1xf32>
    %46 = arith.addf %45, %37 : vector<16x1xf32>
    %c0_61 = arith.constant 0 : index
    %c0_62 = arith.constant 0 : index
    %c0_63 = arith.constant 0 : index
    %47 = vector.load %arg7[%c0_61, %c0_62, %c0_63] : memref<1x16x1xf32, #tpu.memory_space<vmem>>, vector<1x16x1xf32>
    %48 = vector.shape_cast %47 : vector<1x16x1xf32> to vector<16x1xf32>
    %49 = vector.shape_cast %46 : vector<16x1xf32> to vector<1x16x1xf32>
    tpu.vector_store %arg7[%c0_61, %c0_62, %c0_63], %49 {strides = array<i32>} : memref<1x16x1xf32, #tpu.memory_space<vmem>>, vector<1x16x1xf32>,
    %c0_64 = arith.constant 0 : index
    %c0_65 = arith.constant 0 : index
    %c0_66 = arith.constant 0 : index
    %50 = vector.load %arg8[%c0_64, %c0_65, %c0_66] : memref<1x16x1xf32, #tpu.memory_space<vmem>>, vector<1x16x1xf32>
    %51 = vector.shape_cast %50 : vector<1x16x1xf32> to vector<16x1xf32>
    %52 = arith.addf %51, %40 : vector<16x1xf32>
    %c0_67 = arith.constant 0 : index
    %c0_68 = arith.constant 0 : index
    %c0_69 = arith.constant 0 : index
    %53 = vector.load %arg8[%c0_67, %c0_68, %c0_69] : memref<1x16x1xf32, #tpu.memory_space<vmem>>, vector<1x16x1xf32>
    %54 = vector.shape_cast %53 : vector<1x16x1xf32> to vector<16x1xf32>
    %55 = vector.shape_cast %52 : vector<16x1xf32> to vector<1x16x1xf32>
    tpu.vector_store %arg8[%c0_67, %c0_68, %c0_69], %55 {strides = array<i32>} : memref<1x16x1xf32, #tpu.memory_space<vmem>>, vector<1x16x1xf32>,
    return
  }
  func.func @transform_0(%arg0: i32, %arg1: i32) -> (i32, i32, i32, i32, i32) {
    %c0_i32 = arith.constant 0 : i32
    %c0_i32_0 = arith.constant 0 : i32
    %c0_i32_1 = arith.constant 0 : i32
    %c0_i32_2 = arith.constant 0 : i32
    return %arg0, %arg1, %c0_i32, %c0_i32_0, %c0_i32_1 : i32, i32, i32, i32, i32
  }
  func.func @transform_1(%arg0: i32, %arg1: i32) -> (i32, i32, i32, i32) {
    %c0_i32 = arith.constant 0 : i32
    %c0_i32_0 = arith.constant 0 : i32
    %c0_i32_1 = arith.constant 0 : i32
    return %arg0, %arg1, %c0_i32, %c0_i32_0 : i32, i32, i32, i32
  }
  func.func @transform_2(%arg0: i32, %arg1: i32) -> (i32, i32) {
    %c0_i32 = arith.constant 0 : i32
    %c0_i32_0 = arith.constant 0 : i32
    %c0_i32_1 = arith.constant 0 : i32
    return %c0_i32, %c0_i32_0 : i32, i32
  }
  func.func @transform_3(%arg0: i32, %arg1: i32) -> (i32, i32) {
    %c0_i32 = arith.constant 0 : i32
    %c0_i32_0 = arith.constant 0 : i32
    %c0_i32_1 = arith.constant 0 : i32
    return %c0_i32, %c0_i32_0 : i32, i32
  }
  func.func @transform_4(%arg0: i32, %arg1: i32) -> (i32, i32, i32, i32) {
    %c0_i32 = arith.constant 0 : i32
    %c0_i32_0 = arith.constant 0 : i32
    %c0_i32_1 = arith.constant 0 : i32
    return %arg0, %arg1, %c0_i32, %c0_i32_0 : i32, i32, i32, i32
  }
  func.func @transform_5(%arg0: i32, %arg1: i32) -> (i32, i32, i32) {
    %c0_i32 = arith.constant 0 : i32
    %c0_i32_0 = arith.constant 0 : i32
    %c0_i32_1 = arith.constant 0 : i32
    return %arg0, %c0_i32, %c0_i32_0 : i32, i32, i32
  }
  func.func @transform_6(%arg0: i32, %arg1: i32) -> (i32, i32, i32) {
    %c0_i32 = arith.constant 0 : i32
    %c0_i32_0 = arith.constant 0 : i32
    %c0_i32_1 = arith.constant 0 : i32
    return %arg0, %c0_i32, %c0_i32_0 : i32, i32, i32
  }
}

</mosaic_0001>

<bundles_post_ra>
// kernel: squeeze.4
= control target key start
LH: loop header
LB: loop body
LE: loop exit
PB: predicated region body
PF: predicated region fallthrough
CT: control target
= control target key end

     0   :  { %s66_s8 = smov 122   ;;  %vm7_vm0 = vcmask 15360   ;;  %s67_s11 = smov 124   ;;  %s117_s0 = inlined_call_operand.vmem [shape: f32[2,16], index: 0, kind: input, shape index: {}]   ;;  %s118_s1 = inlined_call_operand.vmem [shape: f32[2,8,2], index: 1, kind: output, shape index: {}]  }
   0x1   :  { %v4_v0 = vld [vmem:[%s117_s0] sm:$0x3]  ;;  %s65_s0 = smov 126   ;;  %s68_s12 = smov 120  }
   0x2   :  { %5 = vst [vmem:[#allocation0] sm:$0x3] %v4_v0  ;;  %s69_s13 = smov 118   ;;  %s70_s14 = smov 116  }
   0x3   :  { %s71_s15 = smov 114  }
   0x9   :  { %v9_v1 = vld [vmem:[#allocation0] sm:$0x3]  }
   0xa   :  { %v21_v2 = vld [vmem:[#allocation0] sm:$0x3]   ;;  %10 = vrot.lane.b32.xlu0 %v9_v1, %s65_s0 }
   0xb   :  { %22 = vrot.lane.b32.xlu1 %v21_v2, %s66_s8  ;;  %v15_v3 = vld [vmem:[#allocation0] sm:$0x3]  }
   0xc   :  { %v27_v4 = vld [vmem:[#allocation0] sm:$0x3]  }
   0xd   :  { %v6_v5 = vld [vmem:[#allocation0] sm:$0x3]  }
   0xe   :  { %8 = vst.msk [vmem:[%s118_s1] ss:$8 sm:$0x3] %vm7_vm0, %v6_v5   ;;  %16 = vrot.lane.b32.xlu0 %v15_v3, %s67_s11  ;;  %v33_v6 = vld [vmem:[#allocation0] sm:$0x3]  }
   0xf   :  { %28 = vrot.lane.b32.xlu1 %v27_v4, %s68_s12  ;;  %v39_v7 = vld [vmem:[#allocation0] sm:$0x3]  }
  0x10   :  { %v45_v8 = vld [vmem:[#allocation0] sm:$0x3]  }
  0x12   :  { %34 = vrot.lane.b32.xlu0 %v33_v6, %s69_s13 }
  0x13   :  { %40 = vrot.lane.b32.xlu1 %v39_v7, %s70_s14 }
  0x16   :  { %46 = vrot.lane.b32.xlu0 %v45_v8, %s71_s15 }
  0x7c   :  { %v11_v9 = vpop.permute.xlu0 %10  }
  0x7d   :  { %v23_v10 = vpop.permute.xlu1 %22   ;;  %51 = vst.msk [vmem:[%s118_s1 + $0x1] ss:$8 sm:$0x3] %vm7_vm0, %v11_v9  }
  0x7e   :  { %53 = vst.msk [vmem:[%s118_s1 + $0x3] ss:$8 sm:$0x3] %vm7_vm0, %v23_v10  }
  0x80   :  { %v17_v11 = vpop.permute.xlu0 %16  }
  0x81   :  { %v29_v12 = vpop.permute.xlu1 %28   ;;  %52 = vst.msk [vmem:[%s118_s1 + $0x2] ss:$8 sm:$0x3] %vm7_vm0, %v17_v11  }
  0x82   :  { %54 = vst.msk [vmem:[%s118_s1 + $0x4] ss:$8 sm:$0x3] %vm7_vm0, %v29_v12  }
  0x84   :  { %v35_v13 = vpop.permute.xlu0 %34  }
  0x85   :  { %v41_v14 = vpop.permute.xlu1 %40   ;;  %55 = vst.msk [vmem:[%s118_s1 + $0x5] ss:$8 sm:$0x3] %vm7_vm0, %v35_v13  }
  0x86   :  { %56 = vst.msk [vmem:[%s118_s1 + $0x6] ss:$8 sm:$0x3] %vm7_vm0, %v41_v14  }
  0x88   :  { %v47_v15 = vpop.permute.xlu0 %46  }
  0x89   :  { %57 = vst.msk [vmem:[%s118_s1 + $0x7] ss:$8 sm:$0x3] %vm7_vm0, %v47_v15  }

// kernel: down_block_forward.5
= control target key start
LH: loop header
LB: loop body
LE: loop exit
PB: predicated region body
PF: predicated region fallthrough
CT: control target
= control target key end

     0   :  { %s668_s15 = smov 0   ;;  %s670_s16 = smov 0   ;;  %s739_s0 = inlined_call_operand.vmem [shape: bf16[2,2,16,144], index: 0, kind: input, shape index: {}]   ;;  %s740_s1 = inlined_call_operand.vmem [shape: f32[2,16,1], index: 1, kind: input, shape index: {}]   ;;  %s741_s2 = inlined_call_operand.vmem [shape: f32[2,16,1], index: 2, kind: input, shape index: {}]   ;;  %s742_s3 = inlined_call_operand.vmem [shape: f32[2,2,2,144], index: 3, kind: input, shape index: {}]   ;;  %s743_s4 = inlined_call_operand.vmem [shape: bf16[2,2,16,144], index: 4, kind: output, shape index: {}]  }
   0x1   :  { %s672_s17 = smov 0   ;;  %s674_s18 = smov 0  }
   0x2   :  { %s676_s19 = smov 0  }
   0x3 LB: > { %s23_s20 = sadd.s32 1, %s632_s17  ;;  %s26_s21 = sadd.s32 1, %s636_s18  ;;  %s640_s19 = sphi %s676_s19, %s14_s19   ;;  %s636_s18 = sphi %s674_s18, %s747_s18   ;;  %s632_s17 = sphi %s672_s17, %s746_s17   ;;  %s628_s16 = sphi %s670_s16, %s745_s16   ;;  %s624_s15 = sphi %s668_s15, %s744_s15  }
   0x4   : > { %p24_p0 = scmp.ge.s32.totalorder %s23_s20, 2  ;;  %p536_p1 = scmp.ge.s32.totalorder %s640_s19, 1 }
   0x5   : > { %p218_p2 = scmp.lt.s32.totalorder %s640_s19, 5 }
   0x6   : > { %s749_s20 = smov (%p24_p0, %s23_s20), 0  ;;  %s751_s21 = smov (!%p24_p0, %s26_s21), %s636_s18 }
   0x7   : > { %p219_p3 = pnand %p536_p1, %p218_p2  ;;  %p28_p4 = scmp.ge.s32.totalorder %s751_s21, 2 }
   0x8   : > { %p271_p5 = scmp.lt.s32.totalorder (!%p219_p3), %s628_s16, 1  ;;  %v642_v0 = vmov (!%p219_p3), 0   ;;  %p273_p6 = scmp.lt.s32.totalorder (!%p219_p3), %s624_s15, 1  ;;  %v361_v5 = vlaneseq (!%p219_p3)  ;;  %vm387_vm2 = vcmask (!%p219_p3), 1043456   ;;  %vm388_vm3 = vcmask (!%p219_p3), 130052  }
   0x9   : > { %s753_s21 = smov (%p28_p4, %s751_s21), 0  ;;  %222 = sbr.rel (%p219_p3) target bundleno = 167 (0xa7), region = 36 }
   0xa   : > { %601 = vset.pattern.permute.xlu1 (!%p219_p3), %v642_v0  ;;  %600 = vset.pattern.permute.xlu0 (!%p219_p3), %v642_v0  ;;  %v362_v7 = vshrl.u32 (!%p219_p3), %v361_v5, 7  ;;  %vm389_vm4 = vmor (!%p219_p3), %vm388_vm3, %vm387_vm2 }
   0xc   : > { %v363_v11 = vsub.s32 (!%p219_p3), 0, %v362_v7  ;;  %v367_v12 = vsub.s32 (!%p219_p3), 1, %v362_v7 }
  0x10   : > { %s755_s16 = smov (!%p271_p5, %s628_s16), 1  ;;  %s757_s15 = smov (!%p273_p6, %s624_s15), 1 }
  0x11   : > { %s555_s22 = sshll.u32 %s755_s16, 4  ;;  %s537_s29 = sshll.u32 %s757_s15, 2 }
  0x12   : > { %s289_s25 = scalar_lea.vmem %s741_s2, %s555_s22  ;;  %s284_s28 = scalar_lea.vmem %s740_s1, %s555_s22 }
  0x13   : > { %v330_v1 = vld [vmem:[%s289_s25] sm:$0xff]  ;;  %v331_v3 = vld [vmem:[%s289_s25 + $0x8] sm:$0xff]  ;;  %s538_s30 = sshll.u32 %s755_s16, 3  ;;  %s545_s7 = sshll.u32 %s755_s16, 2 }
  0x14   : > { %v314_v2 = vld [vmem:[%s284_s28] sm:$0xff]  ;;  %334 = vperm.xlu1 %601, %v330_v1   ;;  %v315_v4 = vld [vmem:[%s284_s28 + $0x8] sm:$0xff]  ;;  %s708_s5 = sadd.s32 %s538_s30, %s537_s29  ;;  %s544_s8 = sshll.u32 %s757_s15, 1 }
  0x15   : > { %318 = vperm.xlu0 %600, %v314_v2   ;;  %s539_s6 = sshll.u32 %s708_s5, 2  ;;  %s296_s12 = sadd.s32 %s545_s7, %s544_s8 }
  0x16   : > { %s279_s11 = scalar_lea.vmem %s739_s0, %s539_s6  ;;  %s546_s13 = sshll.u32 %s296_s12, 1 }
  0x17   : > { %v308_v6 = vld [vmem:[%s279_s11] sm:$0xff]  ;;  %s298_s23 = scalar_lea.vmem %s742_s3, %s546_s13  ;;  %v309_v10 = vld [vmem:[%s279_s11 + $0x8] sm:$0xff]  ;;  %s307_s24 = scalar_lea.vmem %s743_s4, %s539_s6 }
  0x18   : > { %339 = vperm.xlu1 %601, %v331_v3   ;;  %v310_v8 = vunpack.c.l.bf16 %v308_v6  ;;  %v311_v9 = vunpack.c.h.bf16 %v308_v6  ;;  %v550_v15 = vld [vmem:[%s298_s23 + $0x1] ss:$2 sm:$0x3]  ;;  %v312_v18 = vunpack.c.l.bf16 %v309_v10  ;;  %v313_v19 = vunpack.c.h.bf16 %v309_v10 }
  0x19   : > { %323 = vperm.xlu0 %600, %v315_v4   ;;  %v364_v22 = vrot.slane %v550_v15, %v363_v11  ;;  %v368_v23 = vrot.slane %v550_v15, %v367_v12 }
  0x93   : > { %v335_v14 = vpop.permute.xlu1 %334 }
  0x94   : > { %v319_v13 = vpop.permute.xlu0 %318 }
  0x95   : > { %v326_v16 = vmul.f32 %v319_v13, %v310_v8  ;;  %v327_v17 = vmul.f32 %v319_v13, %v311_v9 }
  0x97   : > { %v342_v20 = vadd.f32 %v335_v14, %v326_v16  ;;  %v343_v21 = vadd.f32 %v335_v14, %v327_v17  ;;  %v340_v31 = vpop.permute.xlu1 %339 }
  0x98   : > { %v324_v24 = vpop.permute.xlu0 %323 }
  0x99   : > { %vm346_vm0 = vcmp.ge.f32.partialorder %v342_v20, 0.0  ;;  %vm347_vm1 = vcmp.ge.f32.partialorder %v343_v21, 0.0  ;;  %v350_v25 = vmul.f32 0.01, %v342_v20  ;;  %v351_v26 = vmul.f32 0.01, %v343_v21 }
  0x9a   : > { %v328_v27 = vmul.f32 %v324_v24, %v312_v18  ;;  %v329_v28 = vmul.f32 %v324_v24, %v313_v19 }
  0x9b   : > { %v354_v29 = vsel %vm346_vm0, %v342_v20, %v350_v25  ;;  %v355_v30 = vsel %vm347_vm1, %v343_v21, %v351_v26 }
  0x9c   : > { %v371_v32 = vmul.f32 %v364_v22, %v354_v29  ;;  %v372_v33 = vmul.f32 %v368_v23, %v355_v30  ;;  %v344_v34 = vadd.f32 %v340_v31, %v328_v27  ;;  %v345_v35 = vadd.f32 %v340_v31, %v329_v28 }
  0x9e   : > { %v557_v36 = vpack.c.bf16 %v372_v33, %v371_v32  ;;  %vm348_vm5 = vcmp.ge.f32.partialorder %v344_v34, 0.0  ;;  %vm349_vm6 = vcmp.ge.f32.partialorder %v345_v35, 0.0  ;;  %v352_v37 = vmul.f32 0.01, %v344_v34 }
  0x9f   : > { %v353_v38 = vmul.f32 0.01, %v345_v35 }
  0xa0   : > { %390 = vst.msk [vmem:[%s307_s24] sm:$0xff] %vm389_vm4, %v557_v36  ;;  %v356_v39 = vsel %vm348_vm5, %v344_v34, %v352_v37 }
  0xa1   : > { %v357_v40 = vsel %vm349_vm6, %v345_v35, %v353_v38  ;;  %v373_v41 = vmul.f32 %v364_v22, %v356_v39 }
  0xa2   : > { %v374_v42 = vmul.f32 %v368_v23, %v357_v40 }
  0xa4   : > { %v558_v43 = vpack.c.bf16 %v374_v42, %v373_v41 }
  0xa6   : > { %391 = vst.msk [vmem:[%s307_s24 + $0x8] sm:$0xff] %vm389_vm4, %v558_v43 }
  0xa7 PF: > { %s14_s19 = sadd.s32 1, %s640_s19   ;;  %s744_s15 = smov %s632_s17 }
  0xa8   : > { %p11_p7 = scmp.ge.s32.totalorder %s14_s19, 6   ;;  %s745_s16 = smov %s636_s18 }
  0xa9   : > { %s746_s17 = smov %s749_s20  ;;  %s747_s18 = smov %s753_s21 }
  0xaa   :  { %13 = sbr.rel (!%p11_p7) target bundleno = 3 (0x3), region = 76 }

// kernel: down_block_forward.4
= control target key start
LH: loop header
LB: loop body
LE: loop exit
PB: predicated region body
PF: predicated region fallthrough
CT: control target
= control target key end

     0   :  { %s974_s21 = smov 0   ;;  %s976_s22 = smov 0   ;;  %s1132_s0 = inlined_call_operand.vmem [shape: bf16[2,2,1,4,198], index: 0, kind: input, shape index: {}]   ;;  %s1133_s1 = inlined_call_operand.vmem [shape: f32[2,2,2,144], index: 1, kind: input, shape index: {}]   ;;  %s1134_s2 = inlined_call_operand.vmem [shape: bf16[16,36], index: 2, kind: input, shape index: {}]   ;;  %s1135_s3 = inlined_call_operand.vmem [shape: f32[16,1], index: 3, kind: input, shape index: {}]   ;;  %s1136_s4 = inlined_call_operand.vmem [shape: bf16[2,2,16,144], index: 4, kind: output, shape index: {0}]   ;;  %s1137_s5 = inlined_call_operand.vmem [shape: f32[2,16,1], index: 5, kind: output, shape index: {1}]   ;;  %s1138_s6 = inlined_call_operand.vmem [shape: f32[2,16,1], index: 6, kind: output, shape index: {2}]  }
   0x1   :  { %s978_s23 = smov 0   ;;  %s980_s24 = smov 0  }
   0x2   :  { %s982_s25 = smov 0  }
   0x3 LB: > { %s26_s26 = sadd.s32 1, %s918_s23  ;;  %s29_s27 = sadd.s32 1, %s922_s24  ;;  %s926_s25 = sphi %s982_s25, %s17_s25   ;;  %s922_s24 = sphi %s980_s24, %s1144_s24   ;;  %s918_s23 = sphi %s978_s23, %s1143_s23   ;;  %s914_s22 = sphi %s976_s22, %s1142_s22   ;;  %s910_s21 = sphi %s974_s21, %s1141_s21  }
   0x4   : > { %p27_p0 = scmp.ge.s32.totalorder %s26_s26, 2  ;;  %p806_p1 = scmp.ge.s32.totalorder %s926_s25, 1 }
   0x5   : > { %p253_p2 = scmp.lt.s32.totalorder %s926_s25, 5 }
   0x6   : > { %s1146_s26 = smov (%p27_p0, %s26_s26), 0  ;;  %s1148_s27 = smov (!%p27_p0, %s29_s27), %s922_s24 }
   0x7   : > { %p254_p3 = pnand %p806_p1, %p253_p2  ;;  %p31_p4 = scmp.ge.s32.totalorder %s1148_s27, 2 }
   0x8   : > { %p310_p5 = scmp.lt.s32.totalorder (!%p254_p3), %s914_s22, 1  ;;  %p312_p6 = scmp.lt.s32.totalorder (!%p254_p3), %s910_s21, 1  ;;  %v353_v0 = vlaneseq (!%p254_p3)  ;;  %v928_v1 = vmov (!%p254_p3), 1983009808   ;;  %v934_v14 = vmov (!%p254_p3), 0   ;;  %v530_v20 = vld [vmem:[%s1135_s3] sm:$0xff] (!%p254_p3) }
   0x9   : > { %s1150_s27 = smov (%p31_p4, %s1148_s27), 0  ;;  %257 = sbr.rel (%p254_p3) target bundleno = 547 (0x223), region = 36 }
   0xa   : > { %v351_v2 = vunpack.c.l.s4 (!%p254_p3), %v928_v1  ;;  %v1009_v3 = vshrl.u32 (!%p254_p3), %v353_v0, 7  ;;  %s929_s19 = smov (!%p254_p3), 109   ;;  %s930_s20 = smov (!%p254_p3), 126   ;;  %501 = vmatprep.mubr.bf16.mxu0 (!%p254_p3), %v934_v14  ;;  %884 = vset.pattern.permute.xlu0 (!%p254_p3), %v934_v14  ;;  %v531_v21 = vld [vmem:[%s1135_s3 + $0x8] sm:$0xff] (!%p254_p3)  ;;  %vm371_vm0 = vcmask (!%p254_p3), 1039360   ;;  %vm417_vm1 = vcmask (!%p254_p3), 1041408  }
   0xb   : > { %885 = vset.pattern.permute.xlu1 (!%p254_p3), %v934_v14  ;;  %s935_s8 = smov (!%p254_p3), 92   ;;  %s937_s16 = smov (!%p254_p3), 90   ;;  %vm424_vm2 = vcmask (!%p254_p3), 1043456   ;;  %vm429_vm3 = vcmask (!%p254_p3), 1045504   ;;  %vm378_vm4 = vcmask (!%p254_p3), 1031168   ;;  %vm385_vm5 = vcmask (!%p254_p3), 900096  }
   0xc   : > { %v352_v4 = vunpack.c.0.s8 (!%p254_p3), %v351_v2  ;;  %v518_v15 = vsub.s32 (!%p254_p3), 0, %v1009_v3  ;;  %v522_v16 = vsub.s32 (!%p254_p3), 1, %v1009_v3  ;;  %vm397_vm6 = vcmask (!%p254_p3), 883712   ;;  %v887_v59 = vld [vmem:[%s1134_s2] sm:$0xff] (!%p254_p3)   ;;  %p826_p7 = scmp.ne.s32.totalorder (!%p254_p3), %s910_s21, 0 }
   0xd   : > { %vm403_vm7 = vcmask (!%p254_p3), 752640   ;;  %vm391_vm8 = vcmask (!%p254_p3), 891904   ;;  %vm409_vm9 = vcmask (!%p254_p3), 744448   ;;  %vm415_vm10 = vcmask (!%p254_p3), 736256  }
   0xe   : > { %v355_v5 = vsub.s32 (!%p254_p3), %v352_v4, %v1009_v3  ;;  %vm459_vm11 = vcmask (!%p254_p3), 293888   ;;  %vm573_vm12 = vcmask (!%p254_p3), 130052   ;;  %vm577_vm13 = vcmask (!%p254_p3), 130048  }
   0xf   : > { %vm1092_vm14 = vmor (!%p254_p3), %vm573_vm12, %vm424_vm2 }
  0x10   : > { %s1152_s22 = smov (!%p310_p5, %s914_s22), 1  ;;  %vm602_vm15 = vcmask (!%p826_p7), 7168  }
  0x11   : > { %s1012_s28 = scalar_select %p312_p6, %s910_s21, 1 }
  0x12   : > { %s808_s29 = sshll.u32 %s1152_s22, 2  ;;  %s829_s30 = sshll.u32 %s1152_s22, 4 }
  0x13   : > { %s807_s7 = sshll.u32 %s1012_s28, 1  ;;  %s1020_s10 = scalar_lea.vmem %s1137_s5, %s829_s30 }
  0x14   : > { %s1022_s11 = sadd.s32 %s808_s29, %s807_s7  ;;  %s1027_s14 = scalar_lea.vmem %s1138_s6, %s829_s30 }
  0x15   : > { %s809_s15 = sshll.u32 %s1022_s11, 1  ;;  %s931_s29 = smov 127  }
  0x16   : > { %s318_s18 = scalar_lea.vmem %s1132_s0, %s809_s15  ;;  %s932_s30 = smov 110  }
  0x17   : > { %v348_v6 = vld [vmem:[%s318_s18] sm:$0xf]  ;;  %s933_s7 = smov 108   ;;  %s1041_s13 = scalar_lea.vmem %s1133_s1, %s809_s15 }
  0x18   : > { %v356_v7 = vrot.slane %v348_v6, %v355_v5  ;;  %v358_v8 = vcombine.low %v348_v6, %v348_v6  ;;  %v823_v17 = vld [vmem:[%s1041_s13 + $0x1] ss:$2 sm:$0x3]  ;;  %s936_s11 = smov 91  }
  0x19   : > { %v1048_v18 = vrot.slane %v823_v17, %v518_v15  ;;  %v1052_v19 = vrot.slane %v823_v17, %v522_v16  ;;  %v512_v60 = vld [vmem:[%s1041_s13] ss:$2 sm:$0x3] }
  0x1a   : > { %387 = vrot.lane.b32.xlu0 %v356_v7, %s929_s19  ;;  %376 = vrot.lane.b32.xlu1 %v356_v7, %s930_s20  ;;  %v365_v9 = vrot.slane %v358_v8, %v355_v5  ;;  %v373_v10 = vcombine.low %v356_v7, %v356_v7  ;;  %v357_v13 = vcombine.high %v356_v7, %v356_v7 }
  0x1b   : > { %v519_v61 = vrot.slane %v512_v60, %v518_v15  ;;  %v523_v62 = vrot.slane %v512_v60, %v522_v16 }
  0x1c   : > { %v366_v11 = vcombine.high %v365_v9, %v365_v9  ;;  %v380_v12 = vcombine.low %v365_v9, %v365_v9 }
  0x1e   : > { %367 = vrot.lane.b32.xlu0 %v365_v9, %s931_s29  ;;  %374 = vrot.lane.b32.xlu1 %v373_v10, %s930_s20 }
  0x22   : > { %369 = vrot.lane.b32.xlu0 %v366_v11, %s931_s29  ;;  %383 = vrot.lane.b32.xlu1 %v365_v9, %s932_s30 }
  0x26   : > { %381 = vrot.lane.b32.xlu0 %v380_v12, %s932_s30  ;;  %389 = vrot.lane.b32.xlu1 %v357_v13, %s929_s19  ;;  %s813_s30 = sshll.u32 %s1012_s28, 2 }
  0x2a   : > { %393 = vrot.lane.b32.xlu0 %v365_v9, %s933_s7  ;;  %395 = vrot.lane.b32.xlu1 %v366_v11, %s933_s7  ;;  %s814_s7 = sshll.u32 %s1152_s22, 3 }
  0x2e   : > { %399 = vrot.lane.b32.xlu0 %v373_v10, %s935_s8  ;;  %401 = vrot.lane.b32.xlu1 %v356_v7, %s935_s8  ;;  %s334_s8 = sadd.s32 %s814_s7, %s813_s30 }
  0x2f   : > { %s815_s9 = sshll.u32 %s334_s8, 2 }
  0x30   : > { %s336_s12 = scalar_lea.vmem %s1136_s4, %s815_s9 }
  0x32   : > { %405 = vrot.lane.b32.xlu0 %v380_v12, %s936_s11  ;;  %407 = vrot.lane.b32.xlu1 %v365_v9, %s936_s11 }
  0x36   : > { %411 = vrot.lane.b32.xlu0 %v356_v7, %s937_s16  ;;  %413 = vrot.lane.b32.xlu1 %v357_v13, %s937_s16 }
  0x3a   : > { %534 = vperm.xlu0 %884, %v530_v20   ;;  %539 = vperm.xlu1 %885, %v531_v21  }
  0x8c   : > { %v388_v22 = vpop.permute.xlu0 %387  ;;  %v377_v23 = vpop.permute.xlu1 %376 }
  0x90   : > { %v368_v24 = vpop.permute.xlu0 %367  ;;  %v375_v25 = vpop.permute.xlu1 %374 }
  0x91   : > { %v379_v33 = vsel %vm378_vm4, %v375_v25, %v377_v23 }
  0x94   : > { %v370_v26 = vpop.permute.xlu0 %369  ;;  %v384_v27 = vpop.permute.xlu1 %383 }
  0x95   : > { %v372_v28 = vsel %vm371_vm0, %v368_v24, %v370_v26  ;;  %v423_v29 = vsel %vm417_vm1, %v357_v13, %v370_v26 }
  0x96   : > { %v420_v30 = vsel %vm417_vm1, %v356_v7, %v372_v28  ;;  %v428_v31 = vsel %vm424_vm2, %v423_v29, %v377_v23 }
  0x97   : > { %v434_v32 = vsel %vm429_vm3, %v428_v31, %v384_v27  ;;  %v426_v37 = vsel %vm424_vm2, %v420_v30, %v379_v33 }
  0x98   : > { %v382_v34 = vpop.permute.xlu0 %381  ;;  %v390_v35 = vpop.permute.xlu1 %389  ;;  %469 = vmatprep.subr.bf16.mxu0 %v434_v32 }
  0x99   : > { %v386_v36 = vsel %vm385_vm5, %v382_v34, %v384_v27  ;;  %v392_v45 = vsel %vm391_vm8, %v388_v22, %v390_v35 }
  0x9a   : > { %v431_v38 = vsel %vm429_vm3, %v426_v37, %v386_v36  ;;  %v938_v36 = vmov (!%p826_p7), 0.0  }
  0x9b   : > { %470 = vmatpush1.bf16.msra.mxu0 %v431_v38  ;;  %603 = vst.msk [vmem:[%s1020_s10] sm:$0xff] (!%p826_p7), %vm602_vm15, %v938_v36  ;;  %604 = vst.msk [vmem:[%s1020_s10 + $0x8] sm:$0xff] (!%p826_p7), %vm602_vm15, %v938_v36 }
  0x9c   : > { %v394_v39 = vpop.permute.xlu0 %393  ;;  %v396_v40 = vpop.permute.xlu1 %395  ;;  %605 = vst.msk [vmem:[%s1027_s14] sm:$0xff] (!%p826_p7), %vm602_vm15, %v938_v36  ;;  %606 = vst.msk [vmem:[%s1027_s14 + $0x8] sm:$0xff] (!%p826_p7), %vm602_vm15, %v938_v36 }
  0x9d   : > { %v398_v43 = vsel %vm397_vm6, %v394_v39, %v396_v40  ;;  %v441_v46 = vsel %vm417_vm1, %v390_v35, %v396_v40 }
  0x9e   : > { %v438_v47 = vsel %vm417_vm1, %v392_v45, %v398_v43 }
  0xa0   : > { %v400_v41 = vpop.permute.xlu0 %399  ;;  %v402_v42 = vpop.permute.xlu1 %401 }
  0xa1   : > { %v404_v44 = vsel %vm403_vm7, %v400_v41, %v402_v42  ;;  %v445_v48 = vsel %vm424_vm2, %v441_v46, %v402_v42 }
  0xa2   : > { %v443_v53 = vsel %vm424_vm2, %v438_v47, %v404_v44 }
  0xa4   : > { %v406_v49 = vpop.permute.xlu0 %405  ;;  %v408_v50 = vpop.permute.xlu1 %407 }
  0xa5   : > { %v410_v51 = vsel %vm409_vm9, %v406_v49, %v408_v50  ;;  %v450_v52 = vsel %vm429_vm3, %v445_v48, %v408_v50 }
  0xa6   : > { %471 = vmatprep.subr.bf16.mxu0 %v450_v52  ;;  %v447_v54 = vsel %vm429_vm3, %v443_v53, %v410_v51 }
  0xa7   : > { %472 = vmatpush1.bf16.msra.mxu0 %v447_v54 }
  0xa8   : > { %v412_v55 = vpop.permute.xlu0 %411  ;;  %v414_v56 = vpop.permute.xlu1 %413 }
  0xa9   : > { %v416_v57 = vsel %vm415_vm10, %v412_v55, %v414_v56  ;;  %821 = vmatprep.subr.msk.bf16.mxu0 %vm417_vm1, %v414_v56 }
  0xaa   : > { %v464_v58 = vsel %vm417_vm1, %v416_v57, 0 }
  0xab   : > { %474 = vmatpush1.bf16.msra.mxu0 %v464_v58 }
  0xae   : > { %822 = vmatmul.mubr.msk.bf16.vlgmr.msra.gmra.mrb[0].mxu0 %vm459_vm11, %v887_v59 }
  0xb9   : > { %v535_v63 = vpop.permute.xlu0 %534  ;;  %v540_v0 = vpop.permute.xlu1 %539 }
  0xba   : > { %v553_v1 = vmul.f32 %v1048_v18, %v535_v63  ;;  %v554_v2 = vmul.f32 %v1052_v19, %v535_v63  ;;  %v555_v7 = vmul.f32 %v1048_v18, %v540_v0  ;;  %v556_v3 = vmul.f32 %v1052_v19, %v540_v0 }
 0x181   : > { %v503_v4 = vpop.f32.mrb[0].mxu0 }
 0x182   : > { %v526_v5 = vmul.f32 %v519_v61, %v503_v4  ;;  %v505_v6 = vpop.f32.mrb[1].mxu0 }
 0x183   : > { %v527_v8 = vmul.f32 %v523_v62, %v505_v6  ;;  %v507_v9 = vpop.f32.mrb[2].mxu0 }
 0x184   : > { %v557_v10 = vadd.f32 %v553_v1, %v526_v5  ;;  %v528_v11 = vmul.f32 %v519_v61, %v507_v9  ;;  %v509_v12 = vpop.f32.mrb[3].mxu0 }
 0x185   : > { %v558_v13 = vadd.f32 %v554_v2, %v527_v8  ;;  %v529_v14 = vmul.f32 %v523_v62, %v509_v12 }
 0x186   : > { %v559_v16 = vadd.f32 %v555_v7, %v528_v11  ;;  %v586_v22 = vmul.f32 %v557_v10, %v557_v10 }
 0x187   : > { %v831_v17 = vpack.c.bf16 %v558_v13, %v557_v10  ;;  %v560_v18 = vadd.f32 %v556_v3, %v529_v14  ;;  %v578_v19 = vsel %vm577_vm13, %v558_v13, 0.0  ;;  %v587_v20 = vmul.f32 %v558_v13, %v558_v13 }
 0x188   : > { %v579_v21 = vadd.f32 %v578_v19, %v557_v10  ;;  %v588_v28 = vmul.f32 %v559_v16, %v559_v16 }
 0x189   : > { %575 = vst.msk [vmem:[%s336_s12] sm:$0xff] %vm1092_vm14, %v831_v17  ;;  %v832_v23 = vpack.c.bf16 %v560_v18, %v559_v16  ;;  %v582_v24 = vsel %vm577_vm13, %v560_v18, 0.0  ;;  %v589_v25 = vmul.f32 %v560_v18, %v560_v18  ;;  %v590_v26 = vsel %vm577_vm13, %v587_v20, 0.0 }
 0x18a   : > { %580 = vadd.xlane.f32.xlu1 %v579_v21  ;;  %v583_v27 = vadd.f32 %v582_v24, %v559_v16  ;;  %v591_v29 = vadd.f32 %v590_v26, %v586_v22 }
 0x18b   : > { %576 = vst.msk [vmem:[%s336_s12 + $0x8] sm:$0xff] %vm1092_vm14, %v832_v23  ;;  %v594_v30 = vsel %vm577_vm13, %v589_v25, 0.0 }
 0x18c   : > { %584 = vadd.xlane.f32.xlu0 %v583_v27  ;;  %v595_v31 = vadd.f32 %v594_v30, %v588_v28 }
 0x18e   : > { %596 = vadd.xlane.f32.xlu1 %v595_v31 }
 0x190   : > { %592 = vadd.xlane.f32.xlu0 %v591_v29 }
 0x217   : > { %v581_v32 = vpop.xlane.xlu1 %580  ;;  %601 = sbr.rel (%p826_p7) target bundleno = 542 (0x21e), region = 40 }
 0x219   : > { %v585_v33 = vpop.xlane.xlu0 %584 }
 0x21b   : > { %v597_v34 = vpop.xlane.xlu1 %596 }
 0x21d   : > { %v593_v35 = vpop.xlane.xlu0 %592 }
 0x21e PF: > { %v607_v37 = vld [vmem:[%s1020_s10] sm:$0xff]  ;;  %vm611_vm0 = vcmask 7168   ;;  %v608_v38 = vld [vmem:[%s1020_s10 + $0x8] sm:$0xff] }
 0x21f   : > { %v614_v39 = vld [vmem:[%s1027_s14] sm:$0xff]  ;;  %v609_v40 = vadd.f32 %v607_v37, %v581_v32  ;;  %v610_v41 = vadd.f32 %v608_v38, %v585_v33  ;;  %v615_v43 = vld [vmem:[%s1027_s14 + $0x8] sm:$0xff] }
 0x220   : > { %v616_v42 = vadd.f32 %v614_v39, %v593_v35  ;;  %v617_v44 = vadd.f32 %v615_v43, %v597_v34 }
 0x221   : > { %612 = vst.msk [vmem:[%s1020_s10] sm:$0xff] %vm611_vm0, %v609_v40  ;;  %613 = vst.msk [vmem:[%s1020_s10 + $0x8] sm:$0xff] %vm611_vm0, %v610_v41 }
 0x222   : > { %618 = vst.msk [vmem:[%s1027_s14] sm:$0xff] %vm611_vm0, %v616_v42  ;;  %619 = vst.msk [vmem:[%s1027_s14 + $0x8] sm:$0xff] %vm611_vm0, %v617_v44 }
 0x223 PF: > { %s17_s25 = sadd.s32 1, %s926_s25   ;;  %s1141_s21 = smov %s918_s23 }
 0x224   : > { %p14_p8 = scmp.ge.s32.totalorder %s17_s25, 6   ;;  %s1142_s22 = smov %s922_s24 }
 0x225   : > { %s1143_s23 = smov %s1146_s26  ;;  %s1144_s24 = smov %s1150_s27 }
 0x226   :  { %16 = sbr.rel (!%p14_p8) target bundleno = 3 (0x3), region = 98 }

// kernel: down_block_forward.7
= control target key start
LH: loop header
LB: loop body
LE: loop exit
PB: predicated region body
PF: predicated region fallthrough
CT: control target
= control target key end

     0   :  { %s499_s12 = smov 0   ;;  %s501_s13 = smov 0   ;;  %s538_s0 = inlined_call_operand.vmem [shape: bf16[2,1,16,72], index: 0, kind: input, shape index: {}]   ;;  %s539_s1 = inlined_call_operand.vmem [shape: f32[2,16,1], index: 1, kind: input, shape index: {}]   ;;  %s540_s2 = inlined_call_operand.vmem [shape: f32[2,16,1], index: 2, kind: input, shape index: {}]   ;;  %s541_s3 = inlined_call_operand.vmem [shape: f32[2,1,16,72], index: 3, kind: output, shape index: {}]  }
   0x1   :  { %s503_s14 = smov 0  }
   0x2 LB: > { %s25_s15 = sadd.s32 1, %s472_s13  ;;  %p408_p0 = scmp.ge.s32.totalorder %s476_s14, 1  ;;  %s476_s14 = sphi %s503_s14, %s13_s14   ;;  %s472_s13 = sphi %s501_s13, %s543_s13   ;;  %s468_s12 = sphi %s499_s12, %s542_s12  }
   0x3   : > { %p27_p1 = scmp.ge.s32.totalorder %s25_s15, 2  ;;  %p177_p2 = scmp.lt.s32.totalorder %s476_s14, 3 }
   0x5   : > { %s545_s15 = smov (%p27_p1, %s25_s15), 0  ;;  %p178_p3 = pnand %p408_p0, %p177_p2 }
   0x6   : > { %p219_p4 = scmp.lt.s32.totalorder (!%p178_p3), %s468_s12, 1  ;;  %v478_v0 = vmov (!%p178_p3), 0   ;;  %vm285_vm0 = vcmask (!%p178_p3), 588800  }
   0x7   : > { %181 = sbr.rel (%p178_p3) target bundleno = 159 (0x9f), region = 32  ;;  %453 = vset.pattern.permute.xlu1 (!%p178_p3), %v478_v0  ;;  %452 = vset.pattern.permute.xlu0 (!%p178_p3), %v478_v0 }
   0xe   : > { %s547_s12 = smov (!%p219_p4, %s468_s12), 1 }
   0xf   : > { %s420_s16 = sshll.u32 %s547_s12, 4  ;;  %s419_s23 = sshll.u32 %s547_s12, 3 }
  0x10   : > { %s237_s19 = scalar_lea.vmem %s540_s2, %s420_s16  ;;  %s232_s22 = scalar_lea.vmem %s539_s1, %s420_s16 }
  0x11   : > { %v265_v1 = vld [vmem:[%s237_s19] sm:$0xff]  ;;  %v266_v3 = vld [vmem:[%s237_s19 + $0x8] sm:$0xff]  ;;  %s227_s26 = scalar_lea.vmem %s538_s0, %s419_s23  ;;  %s246_s29 = scalar_lea.vmem %s541_s3, %s420_s16 }
  0x12   : > { %269 = vperm.xlu1 %453, %v265_v1   ;;  %v251_v2 = vld [vmem:[%s232_s22] sm:$0xff]  ;;  %v252_v4 = vld [vmem:[%s232_s22 + $0x8] sm:$0xff] }
  0x13   : > { %255 = vperm.xlu0 %452, %v251_v2   ;;  %v424_v5 = vld [vmem:[%s227_s26] sm:$0xff]  }
  0x14   : > { %v425_v6 = vunpack.c.l.bf16 %v424_v5  ;;  %v426_v10 = vunpack.c.h.bf16 %v424_v5 }
  0x16   : > { %274 = vperm.xlu1 %453, %v266_v3  }
  0x17   : > { %260 = vperm.xlu0 %452, %v252_v4  }
  0x91   : > { %v270_v7 = vpop.permute.xlu1 %269 }
  0x92   : > { %v256_v8 = vpop.permute.xlu0 %255 }
  0x93   : > { %v263_v9 = vmul.f32 %v425_v6, %v256_v8 }
  0x95   : > { %v277_v11 = vadd.f32 %v270_v7, %v263_v9  ;;  %v275_v15 = vpop.permute.xlu1 %274 }
  0x96   : > { %v261_v12 = vpop.permute.xlu0 %260 }
  0x97   : > { %vm279_vm1 = vcmp.ge.f32.partialorder %v277_v11, 0.0  ;;  %v281_v13 = vmul.f32 0.01, %v277_v11  ;;  %v264_v14 = vmul.f32 %v426_v10, %v261_v12 }
  0x99   : > { %v283_v16 = vsel %vm279_vm1, %v277_v11, %v281_v13  ;;  %v278_v17 = vadd.f32 %v275_v15, %v264_v14 }
  0x9a   : > { %286 = vst.msk [vmem:[%s246_s29] sm:$0xff] %vm285_vm0, %v283_v16 }
  0x9b   : > { %vm280_vm2 = vcmp.ge.f32.partialorder %v278_v17, 0.0  ;;  %v282_v18 = vmul.f32 0.01, %v278_v17 }
  0x9d   : > { %v284_v19 = vsel %vm280_vm2, %v278_v17, %v282_v18 }
  0x9e   : > { %287 = vst.msk [vmem:[%s246_s29 + $0x8] sm:$0xff] %vm285_vm0, %v284_v19 }
  0x9f PF: > { %s13_s14 = sadd.s32 1, %s476_s14   ;;  %s542_s12 = smov %s472_s13 }
  0xa0   : > { %p10_p5 = scmp.ge.s32.totalorder %s13_s14, 4   ;;  %s543_s13 = smov %s545_s15 }
  0xa2   :  { %12 = sbr.rel (!%p10_p5) target bundleno = 2 (0x2), region = 68 }

// kernel: down_block_forward.6
= control target key start
LH: loop header
LB: loop body
LE: loop exit
PB: predicated region body
PF: predicated region fallthrough
CT: control target
= control target key end

     0   :  { %s838_s21 = smov 0   ;;  %s840_s22 = smov 0   ;;  %s922_s0 = inlined_call_operand.vmem [shape: bf16[2,1,4,16,90], index: 0, kind: input, shape index: {}]   ;;  %s923_s1 = inlined_call_operand.vmem [shape: f32[2,1,2,72], index: 1, kind: input, shape index: {}]   ;;  %s924_s2 = inlined_call_operand.vmem [shape: bf16[16,144], index: 2, kind: input, shape index: {}]   ;;  %s925_s3 = inlined_call_operand.vmem [shape: f32[16,1], index: 3, kind: input, shape index: {}]   ;;  %s926_s4 = inlined_call_operand.vmem [shape: bf16[2,1,16,72], index: 4, kind: output, shape index: {0}]   ;;  %s927_s5 = inlined_call_operand.vmem [shape: f32[2,16,1], index: 5, kind: output, shape index: {1}]   ;;  %s928_s6 = inlined_call_operand.vmem [shape: f32[2,16,1], index: 6, kind: output, shape index: {2}]  }
   0x1   :  { %s842_s23 = smov 0  }
   0x2 LB: > { %s29_s24 = sadd.s32 1, %s792_s22  ;;  %p701_p0 = scmp.ge.s32.totalorder %s796_s23, 1  ;;  %s796_s23 = sphi %s842_s23, %s17_s23   ;;  %s792_s22 = sphi %s840_s22, %s930_s22   ;;  %s788_s21 = sphi %s838_s21, %s929_s21  }
   0x3   : > { %p31_p1 = scmp.ge.s32.totalorder %s29_s24, 2  ;;  %p251_p2 = scmp.lt.s32.totalorder %s796_s23, 3 }
   0x5   : > { %s932_s24 = smov (%p31_p1, %s29_s24), 0  ;;  %p252_p3 = pnand %p701_p0, %p251_p2 }
   0x6   : > { %p306_p4 = scmp.lt.s32.totalorder (!%p252_p3), %s788_s21, 1  ;;  %v798_v0 = vmov (!%p252_p3), 0   ;;  %s799_s29 = smov (!%p252_p3), 127   ;;  %v773_v4 = vld [vmem:[%s924_s2 + $0x4] ss:$8 sps:$4 sm:$0xff] (!%p252_p3)   ;;  %vm403_vm0 = vcmask (!%p252_p3), 130048  }
   0x7   : > { %255 = sbr.rel (%p252_p3) target bundleno = 528 (0x210), region = 36  ;;  %407 = vmatprep.subr.bf16.mxu0 (!%p252_p3), %v798_v0  ;;  %765 = vset.pattern.permute.xlu1 (!%p252_p3), %v798_v0  ;;  %s800_s30 = smov (!%p252_p3), 119   ;;  %v456_v5 = vld [vmem:[%s925_s3] sm:$0xff] (!%p252_p3)  ;;  %v457_v6 = vld [vmem:[%s925_s3 + $0x8] sm:$0xff] (!%p252_p3)  ;;  %vm506_vm1 = vcmask (!%p252_p3), 7168   ;;  %v802_v14 = vmov (!%p252_p3), 0.0  }
   0x8   : > { %766 = vset.pattern.permute.xlu0 (!%p252_p3), %v798_v0  ;;  %s801_s7 = smov (!%p252_p3), 118   ;;  %723 = vmatprep.mubr.msk.bf16.mxu0 (!%p252_p3), %vm403_vm0, %v773_v4  ;;  %v771_v13 = vld [vmem:[%s924_s2] ss:$8 sps:$4 sm:$0xff] (!%p252_p3)   ;;  %vm487_vm2 = vcmask (!%p252_p3), 588800   ;;  %vm484_vm3 = vcmask (!%p252_p3), 584704  }
   0xe   : > { %s934_s21 = smov (!%p306_p4, %s788_s21), 1 }
   0xf   : > { %s730_s25 = sshll.u32 %s934_s21, 5  ;;  %s732_s16 = sshll.u32 %s934_s21, 4 }
  0x10   : > { %s314_s28 = scalar_lea.vmem %s922_s0, %s730_s25  ;;  %s880_s19 = scalar_lea.vmem %s927_s5, %s732_s16 }
  0x11   : > { %v767_v1 = vld [vmem:[%s314_s28] sm:$0xff]   ;;  %v768_v2 = vld [vmem:[%s314_s28 + $0x10] sm:$0xff]   ;;  %v769_v3 = vld [vmem:[%s314_s28 + $0x8] sm:$0xff]   ;;  %507 = vst.msk [vmem:[%s880_s19] sm:$0xff] %vm506_vm1, %v802_v14  ;;  %s704_s20 = sshll.u32 %s934_s21, 1  ;;  %s340_s10 = scalar_lea.vmem %s928_s6, %s732_s16 }
  0x12   : > { %365 = vrot.lane.b32.xlu0 %v767_v1, %s799_s29  ;;  %383 = vrot.lane.b32.xlu1 %v767_v1, %s800_s30  ;;  %v770_v8 = vld [vmem:[%s314_s28 + $0x18] sm:$0xff]   ;;  %508 = vst.msk [vmem:[%s880_s19 + $0x8] sm:$0xff] %vm506_vm1, %v802_v14  ;;  %s321_s27 = scalar_lea.vmem %s923_s1, %s704_s20  ;;  %s731_s28 = sshll.u32 %s934_s21, 3 }
  0x13   : > { %408 = vmatpush1.bf16.msra.mxu0 %v767_v1  ;;  %v725_v15 = vld [vmem:[%s321_s27 + $0x1] ss:$0 sm:$0xff]  ;;  %v724_v17 = vld [vmem:[%s321_s27] ss:$0 sm:$0xff]  ;;  %509 = vst.msk [vmem:[%s340_s10] sm:$0xff] %vm506_vm1, %v802_v14  ;;  %510 = vst.msk [vmem:[%s340_s10 + $0x8] sm:$0xff] %vm506_vm1, %v802_v14 }
  0x14   : > { %409 = vmatprep.subr.bf16.mxu0 %v798_v0 }
  0x16   : > { %380 = vrot.lane.b32.xlu0 %v768_v2, %s799_s29  ;;  %386 = vrot.lane.b32.xlu1 %v769_v3, %s800_s30 }
  0x17   : > { %410 = vmatpush1.bf16.msra.mxu0 %v769_v3 }
  0x18   : > { %411 = vmatprep.subr.bf16.mxu0 %v798_v0  ;;  %v511_v37 = vld [vmem:[%s880_s19] sm:$0xff] }
  0x19   : > { %v512_v39 = vld [vmem:[%s880_s19 + $0x8] sm:$0xff] }
  0x1a   : > { %389 = vrot.lane.b32.xlu0 %v767_v1, %s801_s7  ;;  %460 = vperm.xlu1 %765, %v456_v5   ;;  %s330_s7 = scalar_lea.vmem %s926_s4, %s731_s28  ;;  %v518_v42 = vld [vmem:[%s340_s10] sm:$0xff]  ;;  %v519_v45 = vld [vmem:[%s340_s10 + $0x8] sm:$0xff] }
  0x1e   : > { %465 = vperm.xlu0 %766, %v457_v6  }
  0x84   : > { %v366_v7 = vpop.permute.xlu0 %365  ;;  %v384_v10 = vpop.permute.xlu1 %383 }
  0x85   : > { %412 = vmatpush1.bf16.msra.mxu0 %v366_v7 }
  0x86   : > { %413 = vmatprep.subr.bf16.mxu0 %v798_v0 }
  0x88   : > { %v381_v9 = vpop.permute.xlu0 %380  ;;  %v387_v11 = vpop.permute.xlu1 %386 }
  0x89   : > { %414 = vmatpush1.bf16.msra.mxu0 %v768_v2 }
  0x8a   : > { %415 = vmatprep.subr.bf16.mxu0 %v798_v0 }
  0x8c   : > { %v390_v12 = vpop.permute.xlu0 %389 }
  0x8d   : > { %416 = vmatpush1.bf16.msra.mxu0 %v770_v8 }
  0x8e   : > { %417 = vmatprep.subr.bf16.mxu0 %v798_v0 }
  0x91   : > { %418 = vmatpush1.bf16.msra.mxu0 %v381_v9 }
  0x92   : > { %419 = vmatprep.subr.bf16.mxu0 %v798_v0 }
  0x95   : > { %420 = vmatpush1.bf16.msra.mxu0 %v384_v10 }
  0x96   : > { %421 = vmatprep.subr.bf16.mxu0 %v798_v0 }
  0x99   : > { %422 = vmatpush1.bf16.msra.mxu0 %v387_v11  ;;  %v461_v16 = vpop.permute.xlu1 %460 }
  0x9a   : > { %423 = vmatprep.subr.bf16.mxu0 %v798_v0  ;;  %v472_v19 = vmul.f32 %v725_v15, %v461_v16 }
  0x9d   : > { %424 = vmatpush1.bf16.msra.mxu0 %v390_v12  ;;  %v466_v18 = vpop.permute.xlu0 %465 }
  0x9e   : > { %v473_v23 = vmul.f32 %v725_v15, %v466_v18 }
  0xa0   : > { %440 = vmatmul.mubr.bf16.vlgmr.msra.gmra.mrb[0].mxu0 %v771_v13 }
 0x173   : > { %v441_v20 = vpop.f32.mrb[0].mxu0 }
 0x174   : > { %v454_v21 = vmul.f32 %v724_v17, %v441_v20  ;;  %v443_v22 = vpop.f32.mrb[1].mxu0 }
 0x175   : > { %v444_v24 = vpop.f32.mrb[2].mxu0 }
 0x176   : > { %v474_v25 = vadd.f32 %v472_v19, %v454_v21  ;;  %v455_v26 = vmul.f32 %v724_v17, %v444_v24  ;;  %v446_v27 = vpop.f32.mrb[3].mxu0 }
 0x178   : > { %v734_v28 = vpack.c.bf16 %v474_v25, %v474_v25  ;;  %v475_v29 = vadd.f32 %v473_v23, %v455_v26  ;;  %v488_v30 = vsel %vm487_vm2, %v474_v25, 0.0  ;;  %v494_v31 = vmul.f32 %v474_v25, %v474_v25 }
 0x179   : > { %489 = vadd.xlane.f32.xlu1 %v488_v30 }
 0x17a   : > { %485 = vst.msk [vmem:[%s330_s7] sm:$0xf] %vm484_vm3, %v734_v28  ;;  %v735_v32 = vpack.c.bf16 %v475_v29, %v475_v29  ;;  %v491_v33 = vsel %vm487_vm2, %v475_v29, 0.0  ;;  %v495_v34 = vmul.f32 %v475_v29, %v475_v29  ;;  %v496_v35 = vsel %vm487_vm2, %v494_v31, 0.0 }
 0x17b   : > { %492 = vadd.xlane.f32.xlu0 %v491_v33 }
 0x17c   : > { %486 = vst.msk [vmem:[%s330_s7 + $0x4] sm:$0xf] %vm484_vm3, %v735_v32  ;;  %v499_v36 = vsel %vm487_vm2, %v495_v34, 0.0 }
 0x17d   : > { %497 = vadd.xlane.f32.xlu1 %v496_v35 }
 0x17f   : > { %500 = vadd.xlane.f32.xlu0 %v499_v36 }
 0x206   : > { %v490_v38 = vpop.xlane.xlu1 %489 }
 0x207   : > { %v513_v40 = vadd.f32 %v511_v37, %v490_v38 }
 0x208   : > { %v493_v41 = vpop.xlane.xlu0 %492 }
 0x209   : > { %516 = vst.msk [vmem:[%s880_s19] sm:$0xff] %vm506_vm1, %v513_v40  ;;  %v514_v43 = vadd.f32 %v512_v39, %v493_v41 }
 0x20a   : > { %v498_v44 = vpop.xlane.xlu1 %497 }
 0x20b   : > { %517 = vst.msk [vmem:[%s880_s19 + $0x8] sm:$0xff] %vm506_vm1, %v514_v43  ;;  %v520_v46 = vadd.f32 %v518_v42, %v498_v44 }
 0x20c   : > { %v501_v47 = vpop.xlane.xlu0 %500 }
 0x20d   : > { %522 = vst.msk [vmem:[%s340_s10] sm:$0xff] %vm506_vm1, %v520_v46  ;;  %v521_v48 = vadd.f32 %v519_v45, %v501_v47 }
 0x20f   : > { %523 = vst.msk [vmem:[%s340_s10 + $0x8] sm:$0xff] %vm506_vm1, %v521_v48 }
 0x210 PF: > { %s17_s23 = sadd.s32 1, %s796_s23   ;;  %s929_s21 = smov %s792_s22 }
 0x211   : > { %p14_p5 = scmp.ge.s32.totalorder %s17_s23, 4   ;;  %s930_s22 = smov %s932_s24 }
 0x213   :  { %16 = sbr.rel (!%p14_p5) target bundleno = 2 (0x2), region = 100 }

</bundles_post_ra>
